<compile_context>
chip_gen: v7x
topology: tpu7x:2x2x1
jax: 0.10.0
libtpu: 0.0.40
codegen_flags: <defaults>
</compile_context>

<pallas_src>
import jax
import jax.numpy as jnp
from jax import lax
from jax.experimental import pallas as pl
from jax.experimental.pallas import tpu as pltpu


def rnnlm_kernel(ids_ref,                 # SMEM (T, B) int32 (scalar prefetch)
                 emb_ref,                 # VMEM (V, 1, E) embedding table
                 wcat_ref,                # VMEM (E+H, 4H): rows = [W_ih ; W_hh], gate order [i,f,g,o]
                 blstm_ref,               # VMEM (1, 4H): b_ih + b_hh
                 wfc_ref,                 # VMEM (H, VP): FC weight, vocab padded to VP lanes
                 bfc_ref,                 # VMEM (1, VP)
                 h0_ref, c0_ref,          # VMEM (1, B, H): initial hidden / cell state
                 logits_ref,              # VMEM (T, B, VP) out
                 hN_ref, cN_ref,          # VMEM (1, B, H) out
                 xh_scr,                  # VMEM (B, E+H) scratch: [:, :E]=x_t, [:, E:]=h_{t-1}
                 c_scr):                  # VMEM (B, H)  scratch: c_{t-1}
    T, B = ids_ref.shape
    E = emb_ref.shape[-1]
    H = c_scr.shape[-1]

    # init_hidden(): load h0 / c0.  The x half of xh_scr is fully overwritten
    # at the top of every step, so it needs no init.
    xh_scr[:, E:E + H] = h0_ref[0]
    c_scr[...] = c0_ref[0]

    # Lane mask selecting the tanh ('g') gate of the 4H = 128-lane gates vector.
    # Hoisted out of the loop (JAX does not CSE broadcasts).
    lane = lax.broadcasted_iota(jnp.int32, (B, 4 * H), 1)
    g_mask = (lane >= 2 * H) & (lane < 3 * H)

    # Weights are tiny; load once and keep in vregs across the unrolled loop.
    w_cat = wcat_ref[...]
    b_lstm = blstm_ref[...]
    w_fc = wfc_ref[...]
    b_fc = bfc_ref[...]

    def step(t, carry):
        # --- fused embedding gather (dropout with dp_keep_prob=1.0 is identity) ---
        for b in range(B):                                   # B small & static
            tok = ids_ref[t, b]
            xh_scr[b:b + 1, 0:E] = emb_ref[tok]              # (1, E) row

        # --- LSTM cell: one K=(E+H) matmul on the MXU, gate order [i, f, g, o] ---
        gates = jnp.dot(xh_scr[...], w_cat,
                        preferred_element_type=jnp.float32) + b_lstm      # (B, 4H)
        act = jnp.where(g_mask, jnp.tanh(gates), jax.nn.sigmoid(gates))   # lane-dense
        i_g = act[:, 0 * H:1 * H]
        f_g = act[:, 1 * H:2 * H]
        g_g = act[:, 2 * H:3 * H]
        o_g = act[:, 3 * H:4 * H]

        c_new = f_g * c_scr[...] + i_g * g_g
        h_new = o_g * jnp.tanh(c_new)

        c_scr[...] = c_new
        xh_scr[:, E:E + H] = h_new                            # h_t feeds next step

        # --- fused output projection (lane-dense VP=128 logits slab) ---
        logits_ref[t] = (jnp.dot(h_new, w_fc,
                                 preferred_element_type=jnp.float32) + b_fc)
        return carry

    lax.fori_loop(0, T, step, 0, unroll=True)

    # Final hidden state, written once after the loop.
    hN_ref[0] = xh_scr[:, E:E + H]
    cN_ref[0] = c_scr[...]


@jax.jit
def rnnlm_forward(token_ids, hidden, params):
    """token_ids: (T, B) int32 (seq-first, like nn.LSTM batch_first=False).
    hidden: (h0, c0), each (num_layers=1, B, H).  Returns (logits (T,B,V), (h_n, c_n))."""
    h0, c0 = hidden
    T, B = token_ids.shape
    V, E = params["embedding"].shape
    H = E
    VP = params["w_fc_p"].shape[1]

    emb3 = params["embedding"].reshape(V, 1, E)   # leading-axis-gather layout

    flops = T * (2 * B * (E + H) * 4 * H + 2 * B * H * VP)
    transc = T * (2 * B * 4 * H + B * H)
    bytes_accessed = 4 * (V * E + (E + H) * 4 * H + 4 * H + H * VP + VP
                          + 4 * B * H + T * B * VP) + 4 * T * B

    logits_p, h_n, c_n = pl.pallas_call(
        rnnlm_kernel,
        out_shape=(jax.ShapeDtypeStruct((T, B, VP), jnp.float32),
                   jax.ShapeDtypeStruct((1, B, H), jnp.float32),
                   jax.ShapeDtypeStruct((1, B, H), jnp.float32)),
        grid_spec=pltpu.PrefetchScalarGridSpec(
            num_scalar_prefetch=1,
            grid=(1,),
            in_specs=[
                pl.BlockSpec((V, 1, E), lambda i, ids: (0, 0, 0)),
                pl.BlockSpec((E + H, 4 * H), lambda i, ids: (0, 0)),
                pl.BlockSpec((1, 4 * H), lambda i, ids: (0, 0)),
                pl.BlockSpec((H, VP), lambda i, ids: (0, 0)),
                pl.BlockSpec((1, VP), lambda i, ids: (0, 0)),
                pl.BlockSpec((1, B, H), lambda i, ids: (0, 0, 0)),
                pl.BlockSpec((1, B, H), lambda i, ids: (0, 0, 0)),
            ],
            out_specs=[
                pl.BlockSpec((T, B, VP), lambda i, ids: (0, 0, 0)),
                pl.BlockSpec((1, B, H), lambda i, ids: (0, 0, 0)),
                pl.BlockSpec((1, B, H), lambda i, ids: (0, 0, 0)),
            ],
            scratch_shapes=[
                pltpu.VMEM((B, E + H), jnp.float32),
                pltpu.VMEM((B, H), jnp.float32),
            ],
        ),
        compiler_params=pltpu.CompilerParams(
            dimension_semantics=("arbitrary",)),   # sequential recurrence, one invocation
        cost_estimate=pl.CostEstimate(flops=flops, transcendentals=transc,
                                      bytes_accessed=bytes_accessed),
    )(token_ids, emb3, params["w_cat"], params["b_lstm"],
      params["w_fc_p"], params["b_fc_p"], h0, c0)

    logits = logits_p[..., :V]       # drop lane padding back to the real vocab
    return logits, (h_n, c_n)


def init_params(key, vocab_size, embedding_dim, lane_pad=128):
    E = embedding_dim
    H = E
    V = vocab_size
    VP = ((V + lane_pad - 1) // lane_pad) * lane_pad   # vocab padded to 128 lanes
    k_emb, k_wih, k_whh, k_bih, k_bhh, k_fc = jax.random.split(key, 6)
    init_range = 0.1
    bound = 1.0 / jnp.sqrt(jnp.float32(H))
    # PyTorch-equivalent initialisation, stored pre-transposed / pre-fused for the kernel.
    embedding = jax.random.uniform(k_emb, (V, E), jnp.float32, -init_range, init_range)
    w_ih = jax.random.uniform(k_wih, (E, 4 * H), jnp.float32, -bound, bound)
    w_hh = jax.random.uniform(k_whh, (H, 4 * H), jnp.float32, -bound, bound)
    b_ih = jax.random.uniform(k_bih, (4 * H,), jnp.float32, -bound, bound)
    b_hh = jax.random.uniform(k_bhh, (4 * H,), jnp.float32, -bound, bound)
    w_cat = jnp.concatenate([w_ih, w_hh], axis=0)                    # (E+H, 4H)
    b_lstm = (b_ih + b_hh).reshape(1, 4 * H)
    w_fc = jax.random.uniform(k_fc, (E, V), jnp.float32, -init_range, init_range)
    w_fc_p = jnp.zeros((E, VP), jnp.float32).at[:, :V].set(w_fc)     # zero-padded vocab lanes
    b_fc_p = jnp.zeros((1, VP), jnp.float32)                         # PyTorch fills FC bias with 0
    return dict(embedding=embedding, w_cat=w_cat, b_lstm=b_lstm,
                w_fc_p=w_fc_p, b_fc_p=b_fc_p)


def init_hidden(batch_size, embedding_dim, num_layers=1):
    shape = (num_layers, batch_size, embedding_dim)
    return (jnp.zeros(shape, jnp.float32), jnp.zeros(shape, jnp.float32))


if __name__ == "__main__":
    # Small config: vocab=64, embedding_dim=32, seq=8, batch=2, 1-layer unidirectional LSTM.
    VOCAB, EMB, T, B = 64, 32, 8, 2
    key = jax.random.PRNGKey(0)
    k_params, k_inputs = jax.random.split(key)
    params = init_params(k_params, VOCAB, EMB)
    token_ids = jax.random.randint(k_inputs, (T, B), 0, VOCAB, dtype=jnp.int32)
    hidden = init_hidden(B, EMB)

    logits, (h_n, c_n) = rnnlm_forward(token_ids, hidden, params)
    jax.block_until_ready((logits, h_n, c_n))

    assert logits.shape == (T, B, VOCAB)
    assert h_n.shape == (1, B, EMB) and c_n.shape == (1, B, EMB)
    assert bool(jnp.all(jnp.isfinite(logits)))
    # TODO(synk): multi-layer / bidirectional / GRU variants and dropout with
    # dp_keep_prob < 1 are not implemented (config here is 1-layer unidirectional LSTM, p=0).
    print("KERNEL_OK")
</pallas_src>

<mosaic_0001>
module attributes {stable_mosaic.version = 11 : i64} {
  func.func @rnnlm_kernel(%arg0: i32, %arg1: memref<8x2xi32, #tpu.memory_space<smem>>, %arg2: memref<64x1x32xf32, #tpu.memory_space<vmem>>, %arg3: memref<64x128xf32, #tpu.memory_space<vmem>>, %arg4: memref<1x128xf32, #tpu.memory_space<vmem>>, %arg5: memref<32x128xf32, #tpu.memory_space<vmem>>, %arg6: memref<1x128xf32, #tpu.memory_space<vmem>>, %arg7: memref<1x2x32xf32, #tpu.memory_space<vmem>>, %arg8: memref<1x2x32xf32, #tpu.memory_space<vmem>>, %arg9: memref<8x2x128xf32, #tpu.memory_space<vmem>>, %arg10: memref<1x2x32xf32, #tpu.memory_space<vmem>>, %arg11: memref<1x2x32xf32, #tpu.memory_space<vmem>>, %arg12: memref<2x64xf32, #tpu.memory_space<vmem>>, %arg13: memref<2x32xf32, #tpu.memory_space<vmem>>) attributes {dimension_semantics = [#tpu.dimension_semantics<arbitrary>], iteration_bounds = array<i64: 1>, scalar_prefetch = 1 : i64, scratch_operands = 2 : i64, tpu.core_type = #tpu.core_type<tc>, window_params = [{pipeline_mode = #tpu.pipeline_mode<synchronous>, transform_indices = @transform_0, window_bounds = array<i64: 64, 1, 32>}, {pipeline_mode = #tpu.pipeline_mode<synchronous>, transform_indices = @transform_1, window_bounds = array<i64: 64, 128>}, {pipeline_mode = #tpu.pipeline_mode<synchronous>, transform_indices = @transform_2, window_bounds = array<i64: 1, 128>}, {pipeline_mode = #tpu.pipeline_mode<synchronous>, transform_indices = @transform_3, window_bounds = array<i64: 32, 128>}, {pipeline_mode = #tpu.pipeline_mode<synchronous>, transform_indices = @transform_4, window_bounds = array<i64: 1, 128>}, {pipeline_mode = #tpu.pipeline_mode<synchronous>, transform_indices = @transform_5, window_bounds = array<i64: 1, 2, 32>}, {pipeline_mode = #tpu.pipeline_mode<synchronous>, transform_indices = @transform_6, window_bounds = array<i64: 1, 2, 32>}, {pipeline_mode = #tpu.pipeline_mode<synchronous>, transform_indices = @transform_7, window_bounds = array<i64: 8, 2, 128>}, {pipeline_mode = #tpu.pipeline_mode<synchronous>, transform_indices = @transform_8, window_bounds = array<i64: 1, 2, 32>}, {pipeline_mode = #tpu.pipeline_mode<synchronous>, transform_indices = @transform_9, window_bounds = array<i64: 1, 2, 32>}]} {
    %c0 = arith.constant 0 : index
    %c0_0 = arith.constant 0 : index
    %c0_1 = arith.constant 0 : index
    %0 = vector.load %arg7[%c0, %c0_0, %c0_1] : memref<1x2x32xf32, #tpu.memory_space<vmem>>, vector<1x2x32xf32>
    %1 = vector.shape_cast %0 : vector<1x2x32xf32> to vector<2x32xf32>
    %c0_2 = arith.constant 0 : index
    %c32 = arith.constant 32 : index
    %2 = vector.load %arg12[%c0_2, %c32] : memref<2x64xf32, #tpu.memory_space<vmem>>, vector<2x32xf32>
    tpu.vector_store %arg12[%c0_2, %c32], %1 {strides = array<i32>} : memref<2x64xf32, #tpu.memory_space<vmem>>, vector<2x32xf32>,
    %c0_3 = arith.constant 0 : index
    %c0_4 = arith.constant 0 : index
    %c0_5 = arith.constant 0 : index
    %3 = vector.load %arg8[%c0_3, %c0_4, %c0_5] : memref<1x2x32xf32, #tpu.memory_space<vmem>>, vector<1x2x32xf32>
    %4 = vector.shape_cast %3 : vector<1x2x32xf32> to vector<2x32xf32>
    %c0_6 = arith.constant 0 : index
    %c0_7 = arith.constant 0 : index
    %5 = vector.load %arg13[%c0_6, %c0_7] : memref<2x32xf32, #tpu.memory_space<vmem>>, vector<2x32xf32>
    tpu.vector_store %arg13[%c0_6, %c0_7], %4 {strides = array<i32>} : memref<2x32xf32, #tpu.memory_space<vmem>>, vector<2x32xf32>,
    %6 = tpu.iota {dimensions = array<i32: 1>} : vector<2x128xi32>
    %c64_i32 = arith.constant 64 : i32
    %7 = vector.broadcast %c64_i32 : i32 to vector<2x128xi32>
    %8 = arith.cmpi sge, %6, %7 : vector<2x128xi32>
    %c96_i32 = arith.constant 96 : i32
    %9 = vector.broadcast %c96_i32 : i32 to vector<2x128xi32>
    %10 = arith.cmpi slt, %6, %9 : vector<2x128xi32>
    %11 = arith.andi %8, %10 : vector<2x128xi1>
    %c0_8 = arith.constant 0 : index
    %c0_9 = arith.constant 0 : index
    %12 = vector.load %arg3[%c0_8, %c0_9] : memref<64x128xf32, #tpu.memory_space<vmem>>, vector<64x128xf32>
    %c0_10 = arith.constant 0 : index
    %c0_11 = arith.constant 0 : index
    %13 = vector.load %arg4[%c0_10, %c0_11] : memref<1x128xf32, #tpu.memory_space<vmem>>, vector<1x128xf32>
    %c0_12 = arith.constant 0 : index
    %c0_13 = arith.constant 0 : index
    %14 = vector.load %arg5[%c0_12, %c0_13] : memref<32x128xf32, #tpu.memory_space<vmem>>, vector<32x128xf32>
    %c0_14 = arith.constant 0 : index
    %c0_15 = arith.constant 0 : index
    %15 = vector.load %arg6[%c0_14, %c0_15] : memref<1x128xf32, #tpu.memory_space<vmem>>, vector<1x128xf32>
    %c0_i32 = arith.constant 0 : i32
    %16 = arith.index_cast %c0_i32 : i32 to index
    %c0_16 = arith.constant 0 : index
    %17 = memref.load %arg1[%16, %c0_16] : memref<8x2xi32, #tpu.memory_space<smem>>
    %18 = arith.index_cast %17 : i32 to index
    %c0_17 = arith.constant 0 : index
    %c0_18 = arith.constant 0 : index
    %19 = vector.load %arg2[%18, %c0_17, %c0_18] : memref<64x1x32xf32, #tpu.memory_space<vmem>>, vector<1x1x32xf32>
    %20 = vector.shape_cast %19 : vector<1x1x32xf32> to vector<1x32xf32>
    %c0_19 = arith.constant 0 : index
    %c0_20 = arith.constant 0 : index
    %21 = vector.load %arg12[%c0_19, %c0_20] : memref<2x64xf32, #tpu.memory_space<vmem>>, vector<1x32xf32>
    tpu.vector_store %arg12[%c0_19, %c0_20], %20 {strides = array<i32>} : memref<2x64xf32, #tpu.memory_space<vmem>>, vector<1x32xf32>,
    %22 = arith.index_cast %c0_i32 : i32 to index
    %c1 = arith.constant 1 : index
    %23 = memref.load %arg1[%22, %c1] : memref<8x2xi32, #tpu.memory_space<smem>>
    %24 = arith.index_cast %23 : i32 to index
    %c0_21 = arith.constant 0 : index
    %c0_22 = arith.constant 0 : index
    %25 = vector.load %arg2[%24, %c0_21, %c0_22] : memref<64x1x32xf32, #tpu.memory_space<vmem>>, vector<1x1x32xf32>
    %26 = vector.shape_cast %25 : vector<1x1x32xf32> to vector<1x32xf32>
    %c1_23 = arith.constant 1 : index
    %c0_24 = arith.constant 0 : index
    %27 = vector.load %arg12[%c1_23, %c0_24] : memref<2x64xf32, #tpu.memory_space<vmem>>, vector<1x32xf32>
    tpu.vector_store %arg12[%c1_23, %c0_24], %26 {strides = array<i32>} : memref<2x64xf32, #tpu.memory_space<vmem>>, vector<1x32xf32>,
    %c0_25 = arith.constant 0 : index
    %c0_26 = arith.constant 0 : index
    %28 = vector.load %arg12[%c0_25, %c0_26] : memref<2x64xf32, #tpu.memory_space<vmem>>, vector<2x64xf32>
    %cst = arith.constant dense<0.000000e+00> : vector<2x128xf32>
    %29 = tpu.matmul %28, %12, %cst {dimension_numbers = #tpu.dot_dimension_numbers<[1], [0], [0], [1], [0, 0, 1, 1], [], []>} : vector<2x64xf32>, vector<64x128xf32>, vector<2x128xf32> -> vector<2x128xf32>
    %30 = vector.broadcast %13 : vector<1x128xf32> to vector<2x128xf32>
    %31 = arith.addf %29, %30 : vector<2x128xf32>
    %32 = math.tanh %31 : vector<2x128xf32>
    %33 = arith.negf %31 : vector<2x128xf32>
    %34 = math.exp %33 : vector<2x128xf32>
    %cst_27 = arith.constant 1.000000e+00 : f32
    %35 = vector.broadcast %cst_27 : f32 to vector<2x128xf32>
    %36 = arith.addf %35, %34 : vector<2x128xf32>
    %37 = arith.divf %35, %36 : vector<2x128xf32>
    %38 = arith.select %11, %32, %37 : vector<2x128xi1>, vector<2x128xf32>
    %39 = vector.extract_strided_slice %38 {offsets = [0, 0], sizes = [2, 32], strides = [1, 1]} : vector<2x128xf32> to vector<2x32xf32>
    %40 = vector.extract_strided_slice %38 {offsets = [0, 32], sizes = [2, 32], strides = [1, 1]} : vector<2x128xf32> to vector<2x32xf32>
    %41 = vector.extract_strided_slice %38 {offsets = [0, 64], sizes = [2, 32], strides = [1, 1]} : vector<2x128xf32> to vector<2x32xf32>
    %42 = vector.extract_strided_slice %38 {offsets = [0, 96], sizes = [2, 32], strides = [1, 1]} : vector<2x128xf32> to vector<2x32xf32>
    %c0_28 = arith.constant 0 : index
    %c0_29 = arith.constant 0 : index
    %43 = vector.load %arg13[%c0_28, %c0_29] : memref<2x32xf32, #tpu.memory_space<vmem>>, vector<2x32xf32>
    %44 = arith.mulf %40, %43 : vector<2x32xf32>
    %45 = arith.mulf %39, %41 : vector<2x32xf32>
    %46 = arith.addf %44, %45 : vector<2x32xf32>
    %47 = math.tanh %46 : vector<2x32xf32>
    %48 = arith.mulf %42, %47 : vector<2x32xf32>
    %c0_30 = arith.constant 0 : index
    %c0_31 = arith.constant 0 : index
    %49 = vector.load %arg13[%c0_30, %c0_31] : memref<2x32xf32, #tpu.memory_space<vmem>>, vector<2x32xf32>
    tpu.vector_store %arg13[%c0_30, %c0_31], %46 {strides = array<i32>} : memref<2x32xf32, #tpu.memory_space<vmem>>, vector<2x32xf32>,
    %c0_32 = arith.constant 0 : index
    %c32_33 = arith.constant 32 : index
    %50 = vector.load %arg12[%c0_32, %c32_33] : memref<2x64xf32, #tpu.memory_space<vmem>>, vector<2x32xf32>
    tpu.vector_store %arg12[%c0_32, %c32_33], %48 {strides = array<i32>} : memref<2x64xf32, #tpu.memory_space<vmem>>, vector<2x32xf32>,
    %cst_34 = arith.constant dense<0.000000e+00> : vector<2x128xf32>
    %51 = tpu.matmul %48, %14, %cst_34 {dimension_numbers = #tpu.dot_dimension_numbers<[1], [0], [0], [1], [0, 0, 1, 1], [], []>} : vector<2x32xf32>, vector<32x128xf32>, vector<2x128xf32> -> vector<2x128xf32>
    %52 = vector.broadcast %15 : vector<1x128xf32> to vector<2x128xf32>
    %53 = arith.addf %51, %52 : vector<2x128xf32>
    %54 = arith.index_cast %c0_i32 : i32 to index
    %c0_35 = arith.constant 0 : index
    %c0_36 = arith.constant 0 : index
    %55 = vector.load %arg9[%54, %c0_35, %c0_36] : memref<8x2x128xf32, #tpu.memory_space<vmem>>, vector<1x2x128xf32>
    %56 = vector.shape_cast %55 : vector<1x2x128xf32> to vector<2x128xf32>
    %57 = vector.shape_cast %53 : vector<2x128xf32> to vector<1x2x128xf32>
    tpu.vector_store %arg9[%54, %c0_35, %c0_36], %57 {strides = array<i32>} : memref<8x2x128xf32, #tpu.memory_space<vmem>>, vector<1x2x128xf32>,
    %c1_i32 = arith.constant 1 : i32
    %58 = arith.index_cast %c1_i32 : i32 to index
    %c0_37 = arith.constant 0 : index
    %59 = memref.load %arg1[%58, %c0_37] : memref<8x2xi32, #tpu.memory_space<smem>>
    %60 = arith.index_cast %59 : i32 to index
    %c0_38 = arith.constant 0 : index
    %c0_39 = arith.constant 0 : index
    %61 = vector.load %arg2[%60, %c0_38, %c0_39] : memref<64x1x32xf32, #tpu.memory_space<vmem>>, vector<1x1x32xf32>
    %62 = vector.shape_cast %61 : vector<1x1x32xf32> to vector<1x32xf32>
    %c0_40 = arith.constant 0 : index
    %c0_41 = arith.constant 0 : index
    %63 = vector.load %arg12[%c0_40, %c0_41] : memref<2x64xf32, #tpu.memory_space<vmem>>, vector<1x32xf32>
    tpu.vector_store %arg12[%c0_40, %c0_41], %62 {strides = array<i32>} : memref<2x64xf32, #tpu.memory_space<vmem>>, vector<1x32xf32>,
    %64 = arith.index_cast %c1_i32 : i32 to index
    %c1_42 = arith.constant 1 : index
    %65 = memref.load %arg1[%64, %c1_42] : memref<8x2xi32, #tpu.memory_space<smem>>
    %66 = arith.index_cast %65 : i32 to index
    %c0_43 = arith.constant 0 : index
    %c0_44 = arith.constant 0 : index
    %67 = vector.load %arg2[%66, %c0_43, %c0_44] : memref<64x1x32xf32, #tpu.memory_space<vmem>>, vector<1x1x32xf32>
    %68 = vector.shape_cast %67 : vector<1x1x32xf32> to vector<1x32xf32>
    %c1_45 = arith.constant 1 : index
    %c0_46 = arith.constant 0 : index
    %69 = vector.load %arg12[%c1_45, %c0_46] : memref<2x64xf32, #tpu.memory_space<vmem>>, vector<1x32xf32>
    tpu.vector_store %arg12[%c1_45, %c0_46], %68 {strides = array<i32>} : memref<2x64xf32, #tpu.memory_space<vmem>>, vector<1x32xf32>,
    %c0_47 = arith.constant 0 : index
    %c0_48 = arith.constant 0 : index
    %70 = vector.load %arg12[%c0_47, %c0_48] : memref<2x64xf32, #tpu.memory_space<vmem>>, vector<2x64xf32>
    %cst_49 = arith.constant dense<0.000000e+00> : vector<2x128xf32>
    %71 = tpu.matmul %70, %12, %cst_49 {dimension_numbers = #tpu.dot_dimension_numbers<[1], [0], [0], [1], [0, 0, 1, 1], [], []>} : vector<2x64xf32>, vector<64x128xf32>, vector<2x128xf32> -> vector<2x128xf32>
    %72 = vector.broadcast %13 : vector<1x128xf32> to vector<2x128xf32>
    %73 = arith.addf %71, %72 : vector<2x128xf32>
    %74 = math.tanh %73 : vector<2x128xf32>
    %75 = arith.negf %73 : vector<2x128xf32>
    %76 = math.exp %75 : vector<2x128xf32>
    %cst_50 = arith.constant 1.000000e+00 : f32
    %77 = vector.broadcast %cst_50 : f32 to vector<2x128xf32>
    %78 = arith.addf %77, %76 : vector<2x128xf32>
    %79 = arith.divf %77, %78 : vector<2x128xf32>
    %80 = arith.select %11, %74, %79 : vector<2x128xi1>, vector<2x128xf32>
    %81 = vector.extract_strided_slice %80 {offsets = [0, 0], sizes = [2, 32], strides = [1, 1]} : vector<2x128xf32> to vector<2x32xf32>
    %82 = vector.extract_strided_slice %80 {offsets = [0, 32], sizes = [2, 32], strides = [1, 1]} : vector<2x128xf32> to vector<2x32xf32>
    %83 = vector.extract_strided_slice %80 {offsets = [0, 64], sizes = [2, 32], strides = [1, 1]} : vector<2x128xf32> to vector<2x32xf32>
    %84 = vector.extract_strided_slice %80 {offsets = [0, 96], sizes = [2, 32], strides = [1, 1]} : vector<2x128xf32> to vector<2x32xf32>
    %c0_51 = arith.constant 0 : index
    %c0_52 = arith.constant 0 : index
    %85 = vector.load %arg13[%c0_51, %c0_52] : memref<2x32xf32, #tpu.memory_space<vmem>>, vector<2x32xf32>
    %86 = arith.mulf %82, %85 : vector<2x32xf32>
    %87 = arith.mulf %81, %83 : vector<2x32xf32>
    %88 = arith.addf %86, %87 : vector<2x32xf32>
    %89 = math.tanh %88 : vector<2x32xf32>
    %90 = arith.mulf %84, %89 : vector<2x32xf32>
    %c0_53 = arith.constant 0 : index
    %c0_54 = arith.constant 0 : index
    %91 = vector.load %arg13[%c0_53, %c0_54] : memref<2x32xf32, #tpu.memory_space<vmem>>, vector<2x32xf32>
    tpu.vector_store %arg13[%c0_53, %c0_54], %88 {strides = array<i32>} : memref<2x32xf32, #tpu.memory_space<vmem>>, vector<2x32xf32>,
    %c0_55 = arith.constant 0 : index
    %c32_56 = arith.constant 32 : index
    %92 = vector.load %arg12[%c0_55, %c32_56] : memref<2x64xf32, #tpu.memory_space<vmem>>, vector<2x32xf32>
    tpu.vector_store %arg12[%c0_55, %c32_56], %90 {strides = array<i32>} : memref<2x64xf32, #tpu.memory_space<vmem>>, vector<2x32xf32>,
    %cst_57 = arith.constant dense<0.000000e+00> : vector<2x128xf32>
    %93 = tpu.matmul %90, %14, %cst_57 {dimension_numbers = #tpu.dot_dimension_numbers<[1], [0], [0], [1], [0, 0, 1, 1], [], []>} : vector<2x32xf32>, vector<32x128xf32>, vector<2x128xf32> -> vector<2x128xf32>
    %94 = vector.broadcast %15 : vector<1x128xf32> to vector<2x128xf32>
    %95 = arith.addf %93, %94 : vector<2x128xf32>
    %96 = arith.index_cast %c1_i32 : i32 to index
    %c0_58 = arith.constant 0 : index
    %c0_59 = arith.constant 0 : index
    %97 = vector.load %arg9[%96, %c0_58, %c0_59] : memref<8x2x128xf32, #tpu.memory_space<vmem>>, vector<1x2x128xf32>
    %98 = vector.shape_cast %97 : vector<1x2x128xf32> to vector<2x128xf32>
    %99 = vector.shape_cast %95 : vector<2x128xf32> to vector<1x2x128xf32>
    tpu.vector_store %arg9[%96, %c0_58, %c0_59], %99 {strides = array<i32>} : memref<8x2x128xf32, #tpu.memory_space<vmem>>, vector<1x2x128xf32>,
    %c2_i32 = arith.constant 2 : i32
    %100 = arith.index_cast %c2_i32 : i32 to index
    %c0_60 = arith.constant 0 : index
    %101 = memref.load %arg1[%100, %c0_60] : memref<8x2xi32, #tpu.memory_space<smem>>
    %102 = arith.index_cast %101 : i32 to index
    %c0_61 = arith.constant 0 : index
    %c0_62 = arith.constant 0 : index
    %103 = vector.load %arg2[%102, %c0_61, %c0_62] : memref<64x1x32xf32, #tpu.memory_space<vmem>>, vector<1x1x32xf32>
    %104 = vector.shape_cast %103 : vector<1x1x32xf32> to vector<1x32xf32>
    %c0_63 = arith.constant 0 : index
    %c0_64 = arith.constant 0 : index
    %105 = vector.load %arg12[%c0_63, %c0_64] : memref<2x64xf32, #tpu.memory_space<vmem>>, vector<1x32xf32>
    tpu.vector_store %arg12[%c0_63, %c0_64], %104 {strides = array<i32>} : memref<2x64xf32, #tpu.memory_space<vmem>>, vector<1x32xf32>,
    %106 = arith.index_cast %c2_i32 : i32 to index
    %c1_65 = arith.constant 1 : index
    %107 = memref.load %arg1[%106, %c1_65] : memref<8x2xi32, #tpu.memory_space<smem>>
    %108 = arith.index_cast %107 : i32 to index
    %c0_66 = arith.constant 0 : index
    %c0_67 = arith.constant 0 : index
    %109 = vector.load %arg2[%108, %c0_66, %c0_67] : memref<64x1x32xf32, #tpu.memory_space<vmem>>, vector<1x1x32xf32>
    %110 = vector.shape_cast %109 : vector<1x1x32xf32> to vector<1x32xf32>
    %c1_68 = arith.constant 1 : index
    %c0_69 = arith.constant 0 : index
    %111 = vector.load %arg12[%c1_68, %c0_69] : memref<2x64xf32, #tpu.memory_space<vmem>>, vector<1x32xf32>
    tpu.vector_store %arg12[%c1_68, %c0_69], %110 {strides = array<i32>} : memref<2x64xf32, #tpu.memory_space<vmem>>, vector<1x32xf32>,
    %c0_70 = arith.constant 0 : index
    %c0_71 = arith.constant 0 : index
    %112 = vector.load %arg12[%c0_70, %c0_71] : memref<2x64xf32, #tpu.memory_space<vmem>>, vector<2x64xf32>
    %cst_72 = arith.constant dense<0.000000e+00> : vector<2x128xf32>
    %113 = tpu.matmul %112, %12, %cst_72 {dimension_numbers = #tpu.dot_dimension_numbers<[1], [0], [0], [1], [0, 0, 1, 1], [], []>} : vector<2x64xf32>, vector<64x128xf32>, vector<2x128xf32> -> vector<2x128xf32>
    %114 = vector.broadcast %13 : vector<1x128xf32> to vector<2x128xf32>
    %115 = arith.addf %113, %114 : vector<2x128xf32>
    %116 = math.tanh %115 : vector<2x128xf32>
    %117 = arith.negf %115 : vector<2x128xf32>
    %118 = math.exp %117 : vector<2x128xf32>
    %cst_73 = arith.constant 1.000000e+00 : f32
    %119 = vector.broadcast %cst_73 : f32 to vector<2x128xf32>
    %120 = arith.addf %119, %118 : vector<2x128xf32>
    %121 = arith.divf %119, %120 : vector<2x128xf32>
    %122 = arith.select %11, %116, %121 : vector<2x128xi1>, vector<2x128xf32>
    %123 = vector.extract_strided_slice %122 {offsets = [0, 0], sizes = [2, 32], strides = [1, 1]} : vector<2x128xf32> to vector<2x32xf32>
    %124 = vector.extract_strided_slice %122 {offsets = [0, 32], sizes = [2, 32], strides = [1, 1]} : vector<2x128xf32> to vector<2x32xf32>
    %125 = vector.extract_strided_slice %122 {offsets = [0, 64], sizes = [2, 32], strides = [1, 1]} : vector<2x128xf32> to vector<2x32xf32>
    %126 = vector.extract_strided_slice %122 {offsets = [0, 96], sizes = [2, 32], strides = [1, 1]} : vector<2x128xf32> to vector<2x32xf32>
    %c0_74 = arith.constant 0 : index
    %c0_75 = arith.constant 0 : index
    %127 = vector.load %arg13[%c0_74, %c0_75] : memref<2x32xf32, #tpu.memory_space<vmem>>, vector<2x32xf32>
    %128 = arith.mulf %124, %127 : vector<2x32xf32>
    %129 = arith.mulf %123, %125 : vector<2x32xf32>
    %130 = arith.addf %128, %129 : vector<2x32xf32>
    %131 = math.tanh %130 : vector<2x32xf32>
    %132 = arith.mulf %126, %131 : vector<2x32xf32>
    %c0_76 = arith.constant 0 : index
    %c0_77 = arith.constant 0 : index
    %133 = vector.load %arg13[%c0_76, %c0_77] : memref<2x32xf32, #tpu.memory_space<vmem>>, vector<2x32xf32>
    tpu.vector_store %arg13[%c0_76, %c0_77], %130 {strides = array<i32>} : memref<2x32xf32, #tpu.memory_space<vmem>>, vector<2x32xf32>,
    %c0_78 = arith.constant 0 : index
    %c32_79 = arith.constant 32 : index
    %134 = vector.load %arg12[%c0_78, %c32_79] : memref<2x64xf32, #tpu.memory_space<vmem>>, vector<2x32xf32>
    tpu.vector_store %arg12[%c0_78, %c32_79], %132 {strides = array<i32>} : memref<2x64xf32, #tpu.memory_space<vmem>>, vector<2x32xf32>,
    %cst_80 = arith.constant dense<0.000000e+00> : vector<2x128xf32>
    %135 = tpu.matmul %132, %14, %cst_80 {dimension_numbers = #tpu.dot_dimension_numbers<[1], [0], [0], [1], [0, 0, 1, 1], [], []>} : vector<2x32xf32>, vector<32x128xf32>, vector<2x128xf32> -> vector<2x128xf32>
    %136 = vector.broadcast %15 : vector<1x128xf32> to vector<2x128xf32>
    %137 = arith.addf %135, %136 : vector<2x128xf32>
    %138 = arith.index_cast %c2_i32 : i32 to index
    %c0_81 = arith.constant 0 : index
    %c0_82 = arith.constant 0 : index
    %139 = vector.load %arg9[%138, %c0_81, %c0_82] : memref<8x2x128xf32, #tpu.memory_space<vmem>>, vector<1x2x128xf32>
    %140 = vector.shape_cast %139 : vector<1x2x128xf32> to vector<2x128xf32>
    %141 = vector.shape_cast %137 : vector<2x128xf32> to vector<1x2x128xf32>
    tpu.vector_store %arg9[%138, %c0_81, %c0_82], %141 {strides = array<i32>} : memref<8x2x128xf32, #tpu.memory_space<vmem>>, vector<1x2x128xf32>,
    %c3_i32 = arith.constant 3 : i32
    %142 = arith.index_cast %c3_i32 : i32 to index
    %c0_83 = arith.constant 0 : index
    %143 = memref.load %arg1[%142, %c0_83] : memref<8x2xi32, #tpu.memory_space<smem>>
    %144 = arith.index_cast %143 : i32 to index
    %c0_84 = arith.constant 0 : index
    %c0_85 = arith.constant 0 : index
    %145 = vector.load %arg2[%144, %c0_84, %c0_85] : memref<64x1x32xf32, #tpu.memory_space<vmem>>, vector<1x1x32xf32>
    %146 = vector.shape_cast %145 : vector<1x1x32xf32> to vector<1x32xf32>
    %c0_86 = arith.constant 0 : index
    %c0_87 = arith.constant 0 : index
    %147 = vector.load %arg12[%c0_86, %c0_87] : memref<2x64xf32, #tpu.memory_space<vmem>>, vector<1x32xf32>
    tpu.vector_store %arg12[%c0_86, %c0_87], %146 {strides = array<i32>} : memref<2x64xf32, #tpu.memory_space<vmem>>, vector<1x32xf32>,
    %148 = arith.index_cast %c3_i32 : i32 to index
    %c1_88 = arith.constant 1 : index
    %149 = memref.load %arg1[%148, %c1_88] : memref<8x2xi32, #tpu.memory_space<smem>>
    %150 = arith.index_cast %149 : i32 to index
    %c0_89 = arith.constant 0 : index
    %c0_90 = arith.constant 0 : index
    %151 = vector.load %arg2[%150, %c0_89, %c0_90] : memref<64x1x32xf32, #tpu.memory_space<vmem>>, vector<1x1x32xf32>
    %152 = vector.shape_cast %151 : vector<1x1x32xf32> to vector<1x32xf32>
    %c1_91 = arith.constant 1 : index
    %c0_92 = arith.constant 0 : index
    %153 = vector.load %arg12[%c1_91, %c0_92] : memref<2x64xf32, #tpu.memory_space<vmem>>, vector<1x32xf32>
    tpu.vector_store %arg12[%c1_91, %c0_92], %152 {strides = array<i32>} : memref<2x64xf32, #tpu.memory_space<vmem>>, vector<1x32xf32>,
    %c0_93 = arith.constant 0 : index
    %c0_94 = arith.constant 0 : index
    %154 = vector.load %arg12[%c0_93, %c0_94] : memref<2x64xf32, #tpu.memory_space<vmem>>, vector<2x64xf32>
    %cst_95 = arith.constant dense<0.000000e+00> : vector<2x128xf32>
    %155 = tpu.matmul %154, %12, %cst_95 {dimension_numbers = #tpu.dot_dimension_numbers<[1], [0], [0], [1], [0, 0, 1, 1], [], []>} : vector<2x64xf32>, vector<64x128xf32>, vector<2x128xf32> -> vector<2x128xf32>
    %156 = vector.broadcast %13 : vector<1x128xf32> to vector<2x128xf32>
    %157 = arith.addf %155, %156 : vector<2x128xf32>
    %158 = math.tanh %157 : vector<2x128xf32>
    %159 = arith.negf %157 : vector<2x128xf32>
    %160 = math.exp %159 : vector<2x128xf32>
    %cst_96 = arith.constant 1.000000e+00 : f32
    %161 = vector.broadcast %cst_96 : f32 to vector<2x128xf32>
    %162 = arith.addf %161, %160 : vector<2x128xf32>
    %163 = arith.divf %161, %162 : vector<2x128xf32>
    %164 = arith.select %11, %158, %163 : vector<2x128xi1>, vector<2x128xf32>
    %165 = vector.extract_strided_slice %164 {offsets = [0, 0], sizes = [2, 32], strides = [1, 1]} : vector<2x128xf32> to vector<2x32xf32>
    %166 = vector.extract_strided_slice %164 {offsets = [0, 32], sizes = [2, 32], strides = [1, 1]} : vector<2x128xf32> to vector<2x32xf32>
    %167 = vector.extract_strided_slice %164 {offsets = [0, 64], sizes = [2, 32], strides = [1, 1]} : vector<2x128xf32> to vector<2x32xf32>
    %168 = vector.extract_strided_slice %164 {offsets = [0, 96], sizes = [2, 32], strides = [1, 1]} : vector<2x128xf32> to vector<2x32xf32>
    %c0_97 = arith.constant 0 : index
    %c0_98 = arith.constant 0 : index
    %169 = vector.load %arg13[%c0_97, %c0_98] : memref<2x32xf32, #tpu.memory_space<vmem>>, vector<2x32xf32>
    %170 = arith.mulf %166, %169 : vector<2x32xf32>
    %171 = arith.mulf %165, %167 : vector<2x32xf32>
    %172 = arith.addf %170, %171 : vector<2x32xf32>
    %173 = math.tanh %172 : vector<2x32xf32>
    %174 = arith.mulf %168, %173 : vector<2x32xf32>
    %c0_99 = arith.constant 0 : index
    %c0_100 = arith.constant 0 : index
    %175 = vector.load %arg13[%c0_99, %c0_100] : memref<2x32xf32, #tpu.memory_space<vmem>>, vector<2x32xf32>
    tpu.vector_store %arg13[%c0_99, %c0_100], %172 {strides = array<i32>} : memref<2x32xf32, #tpu.memory_space<vmem>>, vector<2x32xf32>,
    %c0_101 = arith.constant 0 : index
    %c32_102 = arith.constant 32 : index
    %176 = vector.load %arg12[%c0_101, %c32_102] : memref<2x64xf32, #tpu.memory_space<vmem>>, vector<2x32xf32>
    tpu.vector_store %arg12[%c0_101, %c32_102], %174 {strides = array<i32>} : memref<2x64xf32, #tpu.memory_space<vmem>>, vector<2x32xf32>,
    %cst_103 = arith.constant dense<0.000000e+00> : vector<2x128xf32>
    %177 = tpu.matmul %174, %14, %cst_103 {dimension_numbers = #tpu.dot_dimension_numbers<[1], [0], [0], [1], [0, 0, 1, 1], [], []>} : vector<2x32xf32>, vector<32x128xf32>, vector<2x128xf32> -> vector<2x128xf32>
    %178 = vector.broadcast %15 : vector<1x128xf32> to vector<2x128xf32>
    %179 = arith.addf %177, %178 : vector<2x128xf32>
    %180 = arith.index_cast %c3_i32 : i32 to index
    %c0_104 = arith.constant 0 : index
    %c0_105 = arith.constant 0 : index
    %181 = vector.load %arg9[%180, %c0_104, %c0_105] : memref<8x2x128xf32, #tpu.memory_space<vmem>>, vector<1x2x128xf32>
    %182 = vector.shape_cast %181 : vector<1x2x128xf32> to vector<2x128xf32>
    %183 = vector.shape_cast %179 : vector<2x128xf32> to vector<1x2x128xf32>
    tpu.vector_store %arg9[%180, %c0_104, %c0_105], %183 {strides = array<i32>} : memref<8x2x128xf32, #tpu.memory_space<vmem>>, vector<1x2x128xf32>,
    %c4_i32 = arith.constant 4 : i32
    %184 = arith.index_cast %c4_i32 : i32 to index
    %c0_106 = arith.constant 0 : index
    %185 = memref.load %arg1[%184, %c0_106] : memref<8x2xi32, #tpu.memory_space<smem>>
    %186 = arith.index_cast %185 : i32 to index
    %c0_107 = arith.constant 0 : index
    %c0_108 = arith.constant 0 : index
    %187 = vector.load %arg2[%186, %c0_107, %c0_108] : memref<64x1x32xf32, #tpu.memory_space<vmem>>, vector<1x1x32xf32>
    %188 = vector.shape_cast %187 : vector<1x1x32xf32> to vector<1x32xf32>
    %c0_109 = arith.constant 0 : index
    %c0_110 = arith.constant 0 : index
    %189 = vector.load %arg12[%c0_109, %c0_110] : memref<2x64xf32, #tpu.memory_space<vmem>>, vector<1x32xf32>
    tpu.vector_store %arg12[%c0_109, %c0_110], %188 {strides = array<i32>} : memref<2x64xf32, #tpu.memory_space<vmem>>, vector<1x32xf32>,
    %190 = arith.index_cast %c4_i32 : i32 to index
    %c1_111 = arith.constant 1 : index
    %191 = memref.load %arg1[%190, %c1_111] : memref<8x2xi32, #tpu.memory_space<smem>>
    %192 = arith.index_cast %191 : i32 to index
    %c0_112 = arith.constant 0 : index
    %c0_113 = arith.constant 0 : index
    %193 = vector.load %arg2[%192, %c0_112, %c0_113] : memref<64x1x32xf32, #tpu.memory_space<vmem>>, vector<1x1x32xf32>
    %194 = vector.shape_cast %193 : vector<1x1x32xf32> to vector<1x32xf32>
    %c1_114 = arith.constant 1 : index
    %c0_115 = arith.constant 0 : index
    %195 = vector.load %arg12[%c1_114, %c0_115] : memref<2x64xf32, #tpu.memory_space<vmem>>, vector<1x32xf32>
    tpu.vector_store %arg12[%c1_114, %c0_115], %194 {strides = array<i32>} : memref<2x64xf32, #tpu.memory_space<vmem>>, vector<1x32xf32>,
    %c0_116 = arith.constant 0 : index
    %c0_117 = arith.constant 0 : index
    %196 = vector.load %arg12[%c0_116, %c0_117] : memref<2x64xf32, #tpu.memory_space<vmem>>, vector<2x64xf32>
    %cst_118 = arith.constant dense<0.000000e+00> : vector<2x128xf32>
    %197 = tpu.matmul %196, %12, %cst_118 {dimension_numbers = #tpu.dot_dimension_numbers<[1], [0], [0], [1], [0, 0, 1, 1], [], []>} : vector<2x64xf32>, vector<64x128xf32>, vector<2x128xf32> -> vector<2x128xf32>
    %198 = vector.broadcast %13 : vector<1x128xf32> to vector<2x128xf32>
    %199 = arith.addf %197, %198 : vector<2x128xf32>
    %200 = math.tanh %199 : vector<2x128xf32>
    %201 = arith.negf %199 : vector<2x128xf32>
    %202 = math.exp %201 : vector<2x128xf32>
    %cst_119 = arith.constant 1.000000e+00 : f32
    %203 = vector.broadcast %cst_119 : f32 to vector<2x128xf32>
    %204 = arith.addf %203, %202 : vector<2x128xf32>
    %205 = arith.divf %203, %204 : vector<2x128xf32>
    %206 = arith.select %11, %200, %205 : vector<2x128xi1>, vector<2x128xf32>
    %207 = vector.extract_strided_slice %206 {offsets = [0, 0], sizes = [2, 32], strides = [1, 1]} : vector<2x128xf32> to vector<2x32xf32>
    %208 = vector.extract_strided_slice %206 {offsets = [0, 32], sizes = [2, 32], strides = [1, 1]} : vector<2x128xf32> to vector<2x32xf32>
    %209 = vector.extract_strided_slice %206 {offsets = [0, 64], sizes = [2, 32], strides = [1, 1]} : vector<2x128xf32> to vector<2x32xf32>
    %210 = vector.extract_strided_slice %206 {offsets = [0, 96], sizes = [2, 32], strides = [1, 1]} : vector<2x128xf32> to vector<2x32xf32>
    %c0_120 = arith.constant 0 : index
    %c0_121 = arith.constant 0 : index
    %211 = vector.load %arg13[%c0_120, %c0_121] : memref<2x32xf32, #tpu.memory_space<vmem>>, vector<2x32xf32>
    %212 = arith.mulf %208, %211 : vector<2x32xf32>
    %213 = arith.mulf %207, %209 : vector<2x32xf32>
    %214 = arith.addf %212, %213 : vector<2x32xf32>
    %215 = math.tanh %214 : vector<2x32xf32>
    %216 = arith.mulf %210, %215 : vector<2x32xf32>
    %c0_122 = arith.constant 0 : index
    %c0_123 = arith.constant 0 : index
    %217 = vector.load %arg13[%c0_122, %c0_123] : memref<2x32xf32, #tpu.memory_space<vmem>>, vector<2x32xf32>
    tpu.vector_store %arg13[%c0_122, %c0_123], %214 {strides = array<i32>} : memref<2x32xf32, #tpu.memory_space<vmem>>, vector<2x32xf32>,
    %c0_124 = arith.constant 0 : index
    %c32_125 = arith.constant 32 : index
    %218 = vector.load %arg12[%c0_124, %c32_125] : memref<2x64xf32, #tpu.memory_space<vmem>>, vector<2x32xf32>
    tpu.vector_store %arg12[%c0_124, %c32_125], %216 {strides = array<i32>} : memref<2x64xf32, #tpu.memory_space<vmem>>, vector<2x32xf32>,
    %cst_126 = arith.constant dense<0.000000e+00> : vector<2x128xf32>
    %219 = tpu.matmul %216, %14, %cst_126 {dimension_numbers = #tpu.dot_dimension_numbers<[1], [0], [0], [1], [0, 0, 1, 1], [], []>} : vector<2x32xf32>, vector<32x128xf32>, vector<2x128xf32> -> vector<2x128xf32>
    %220 = vector.broadcast %15 : vector<1x128xf32> to vector<2x128xf32>
    %221 = arith.addf %219, %220 : vector<2x128xf32>
    %222 = arith.index_cast %c4_i32 : i32 to index
    %c0_127 = arith.constant 0 : index
    %c0_128 = arith.constant 0 : index
    %223 = vector.load %arg9[%222, %c0_127, %c0_128] : memref<8x2x128xf32, #tpu.memory_space<vmem>>, vector<1x2x128xf32>
    %224 = vector.shape_cast %223 : vector<1x2x128xf32> to vector<2x128xf32>
    %225 = vector.shape_cast %221 : vector<2x128xf32> to vector<1x2x128xf32>
    tpu.vector_store %arg9[%222, %c0_127, %c0_128], %225 {strides = array<i32>} : memref<8x2x128xf32, #tpu.memory_space<vmem>>, vector<1x2x128xf32>,
    %c5_i32 = arith.constant 5 : i32
    %226 = arith.index_cast %c5_i32 : i32 to index
    %c0_129 = arith.constant 0 : index
    %227 = memref.load %arg1[%226, %c0_129] : memref<8x2xi32, #tpu.memory_space<smem>>
    %228 = arith.index_cast %227 : i32 to index
    %c0_130 = arith.constant 0 : index
    %c0_131 = arith.constant 0 : index
    %229 = vector.load %arg2[%228, %c0_130, %c0_131] : memref<64x1x32xf32, #tpu.memory_space<vmem>>, vector<1x1x32xf32>
    %230 = vector.shape_cast %229 : vector<1x1x32xf32> to vector<1x32xf32>
    %c0_132 = arith.constant 0 : index
    %c0_133 = arith.constant 0 : index
    %231 = vector.load %arg12[%c0_132, %c0_133] : memref<2x64xf32, #tpu.memory_space<vmem>>, vector<1x32xf32>
    tpu.vector_store %arg12[%c0_132, %c0_133], %230 {strides = array<i32>} : memref<2x64xf32, #tpu.memory_space<vmem>>, vector<1x32xf32>,
    %232 = arith.index_cast %c5_i32 : i32 to index
    %c1_134 = arith.constant 1 : index
    %233 = memref.load %arg1[%232, %c1_134] : memref<8x2xi32, #tpu.memory_space<smem>>
    %234 = arith.index_cast %233 : i32 to index
    %c0_135 = arith.constant 0 : index
    %c0_136 = arith.constant 0 : index
    %235 = vector.load %arg2[%234, %c0_135, %c0_136] : memref<64x1x32xf32, #tpu.memory_space<vmem>>, vector<1x1x32xf32>
    %236 = vector.shape_cast %235 : vector<1x1x32xf32> to vector<1x32xf32>
    %c1_137 = arith.constant 1 : index
    %c0_138 = arith.constant 0 : index
    %237 = vector.load %arg12[%c1_137, %c0_138] : memref<2x64xf32, #tpu.memory_space<vmem>>, vector<1x32xf32>
    tpu.vector_store %arg12[%c1_137, %c0_138], %236 {strides = array<i32>} : memref<2x64xf32, #tpu.memory_space<vmem>>, vector<1x32xf32>,
    %c0_139 = arith.constant 0 : index
    %c0_140 = arith.constant 0 : index
    %238 = vector.load %arg12[%c0_139, %c0_140] : memref<2x64xf32, #tpu.memory_space<vmem>>, vector<2x64xf32>
    %cst_141 = arith.constant dense<0.000000e+00> : vector<2x128xf32>
    %239 = tpu.matmul %238, %12, %cst_141 {dimension_numbers = #tpu.dot_dimension_numbers<[1], [0], [0], [1], [0, 0, 1, 1], [], []>} : vector<2x64xf32>, vector<64x128xf32>, vector<2x128xf32> -> vector<2x128xf32>
    %240 = vector.broadcast %13 : vector<1x128xf32> to vector<2x128xf32>
    %241 = arith.addf %239, %240 : vector<2x128xf32>
    %242 = math.tanh %241 : vector<2x128xf32>
    %243 = arith.negf %241 : vector<2x128xf32>
    %244 = math.exp %243 : vector<2x128xf32>
    %cst_142 = arith.constant 1.000000e+00 : f32
    %245 = vector.broadcast %cst_142 : f32 to vector<2x128xf32>
    %246 = arith.addf %245, %244 : vector<2x128xf32>
    %247 = arith.divf %245, %246 : vector<2x128xf32>
    %248 = arith.select %11, %242, %247 : vector<2x128xi1>, vector<2x128xf32>
    %249 = vector.extract_strided_slice %248 {offsets = [0, 0], sizes = [2, 32], strides = [1, 1]} : vector<2x128xf32> to vector<2x32xf32>
    %250 = vector.extract_strided_slice %248 {offsets = [0, 32], sizes = [2, 32], strides = [1, 1]} : vector<2x128xf32> to vector<2x32xf32>
    %251 = vector.extract_strided_slice %248 {offsets = [0, 64], sizes = [2, 32], strides = [1, 1]} : vector<2x128xf32> to vector<2x32xf32>
    %252 = vector.extract_strided_slice %248 {offsets = [0, 96], sizes = [2, 32], strides = [1, 1]} : vector<2x128xf32> to vector<2x32xf32>
    %c0_143 = arith.constant 0 : index
    %c0_144 = arith.constant 0 : index
    %253 = vector.load %arg13[%c0_143, %c0_144] : memref<2x32xf32, #tpu.memory_space<vmem>>, vector<2x32xf32>
    %254 = arith.mulf %250, %253 : vector<2x32xf32>
    %255 = arith.mulf %249, %251 : vector<2x32xf32>
    %256 = arith.addf %254, %255 : vector<2x32xf32>
    %257 = math.tanh %256 : vector<2x32xf32>
    %258 = arith.mulf %252, %257 : vector<2x32xf32>
    %c0_145 = arith.constant 0 : index
    %c0_146 = arith.constant 0 : index
    %259 = vector.load %arg13[%c0_145, %c0_146] : memref<2x32xf32, #tpu.memory_space<vmem>>, vector<2x32xf32>
    tpu.vector_store %arg13[%c0_145, %c0_146], %256 {strides = array<i32>} : memref<2x32xf32, #tpu.memory_space<vmem>>, vector<2x32xf32>,
    %c0_147 = arith.constant 0 : index
    %c32_148 = arith.constant 32 : index
    %260 = vector.load %arg12[%c0_147, %c32_148] : memref<2x64xf32, #tpu.memory_space<vmem>>, vector<2x32xf32>
    tpu.vector_store %arg12[%c0_147, %c32_148], %258 {strides = array<i32>} : memref<2x64xf32, #tpu.memory_space<vmem>>, vector<2x32xf32>,
    %cst_149 = arith.constant dense<0.000000e+00> : vector<2x128xf32>
    %261 = tpu.matmul %258, %14, %cst_149 {dimension_numbers = #tpu.dot_dimension_numbers<[1], [0], [0], [1], [0, 0, 1, 1], [], []>} : vector<2x32xf32>, vector<32x128xf32>, vector<2x128xf32> -> vector<2x128xf32>
    %262 = vector.broadcast %15 : vector<1x128xf32> to vector<2x128xf32>
    %263 = arith.addf %261, %262 : vector<2x128xf32>
    %264 = arith.index_cast %c5_i32 : i32 to index
    %c0_150 = arith.constant 0 : index
    %c0_151 = arith.constant 0 : index
    %265 = vector.load %arg9[%264, %c0_150, %c0_151] : memref<8x2x128xf32, #tpu.memory_space<vmem>>, vector<1x2x128xf32>
    %266 = vector.shape_cast %265 : vector<1x2x128xf32> to vector<2x128xf32>
    %267 = vector.shape_cast %263 : vector<2x128xf32> to vector<1x2x128xf32>
    tpu.vector_store %arg9[%264, %c0_150, %c0_151], %267 {strides = array<i32>} : memref<8x2x128xf32, #tpu.memory_space<vmem>>, vector<1x2x128xf32>,
    %c6_i32 = arith.constant 6 : i32
    %268 = arith.index_cast %c6_i32 : i32 to index
    %c0_152 = arith.constant 0 : index
    %269 = memref.load %arg1[%268, %c0_152] : memref<8x2xi32, #tpu.memory_space<smem>>
    %270 = arith.index_cast %269 : i32 to index
    %c0_153 = arith.constant 0 : index
    %c0_154 = arith.constant 0 : index
    %271 = vector.load %arg2[%270, %c0_153, %c0_154] : memref<64x1x32xf32, #tpu.memory_space<vmem>>, vector<1x1x32xf32>
    %272 = vector.shape_cast %271 : vector<1x1x32xf32> to vector<1x32xf32>
    %c0_155 = arith.constant 0 : index
    %c0_156 = arith.constant 0 : index
    %273 = vector.load %arg12[%c0_155, %c0_156] : memref<2x64xf32, #tpu.memory_space<vmem>>, vector<1x32xf32>
    tpu.vector_store %arg12[%c0_155, %c0_156], %272 {strides = array<i32>} : memref<2x64xf32, #tpu.memory_space<vmem>>, vector<1x32xf32>,
    %274 = arith.index_cast %c6_i32 : i32 to index
    %c1_157 = arith.constant 1 : index
    %275 = memref.load %arg1[%274, %c1_157] : memref<8x2xi32, #tpu.memory_space<smem>>
    %276 = arith.index_cast %275 : i32 to index
    %c0_158 = arith.constant 0 : index
    %c0_159 = arith.constant 0 : index
    %277 = vector.load %arg2[%276, %c0_158, %c0_159] : memref<64x1x32xf32, #tpu.memory_space<vmem>>, vector<1x1x32xf32>
    %278 = vector.shape_cast %277 : vector<1x1x32xf32> to vector<1x32xf32>
    %c1_160 = arith.constant 1 : index
    %c0_161 = arith.constant 0 : index
    %279 = vector.load %arg12[%c1_160, %c0_161] : memref<2x64xf32, #tpu.memory_space<vmem>>, vector<1x32xf32>
    tpu.vector_store %arg12[%c1_160, %c0_161], %278 {strides = array<i32>} : memref<2x64xf32, #tpu.memory_space<vmem>>, vector<1x32xf32>,
    %c0_162 = arith.constant 0 : index
    %c0_163 = arith.constant 0 : index
    %280 = vector.load %arg12[%c0_162, %c0_163] : memref<2x64xf32, #tpu.memory_space<vmem>>, vector<2x64xf32>
    %cst_164 = arith.constant dense<0.000000e+00> : vector<2x128xf32>
    %281 = tpu.matmul %280, %12, %cst_164 {dimension_numbers = #tpu.dot_dimension_numbers<[1], [0], [0], [1], [0, 0, 1, 1], [], []>} : vector<2x64xf32>, vector<64x128xf32>, vector<2x128xf32> -> vector<2x128xf32>
    %282 = vector.broadcast %13 : vector<1x128xf32> to vector<2x128xf32>
    %283 = arith.addf %281, %282 : vector<2x128xf32>
    %284 = math.tanh %283 : vector<2x128xf32>
    %285 = arith.negf %283 : vector<2x128xf32>
    %286 = math.exp %285 : vector<2x128xf32>
    %cst_165 = arith.constant 1.000000e+00 : f32
    %287 = vector.broadcast %cst_165 : f32 to vector<2x128xf32>
    %288 = arith.addf %287, %286 : vector<2x128xf32>
    %289 = arith.divf %287, %288 : vector<2x128xf32>
    %290 = arith.select %11, %284, %289 : vector<2x128xi1>, vector<2x128xf32>
    %291 = vector.extract_strided_slice %290 {offsets = [0, 0], sizes = [2, 32], strides = [1, 1]} : vector<2x128xf32> to vector<2x32xf32>
    %292 = vector.extract_strided_slice %290 {offsets = [0, 32], sizes = [2, 32], strides = [1, 1]} : vector<2x128xf32> to vector<2x32xf32>
    %293 = vector.extract_strided_slice %290 {offsets = [0, 64], sizes = [2, 32], strides = [1, 1]} : vector<2x128xf32> to vector<2x32xf32>
    %294 = vector.extract_strided_slice %290 {offsets = [0, 96], sizes = [2, 32], strides = [1, 1]} : vector<2x128xf32> to vector<2x32xf32>
    %c0_166 = arith.constant 0 : index
    %c0_167 = arith.constant 0 : index
    %295 = vector.load %arg13[%c0_166, %c0_167] : memref<2x32xf32, #tpu.memory_space<vmem>>, vector<2x32xf32>
    %296 = arith.mulf %292, %295 : vector<2x32xf32>
    %297 = arith.mulf %291, %293 : vector<2x32xf32>
    %298 = arith.addf %296, %297 : vector<2x32xf32>
    %299 = math.tanh %298 : vector<2x32xf32>
    %300 = arith.mulf %294, %299 : vector<2x32xf32>
    %c0_168 = arith.constant 0 : index
    %c0_169 = arith.constant 0 : index
    %301 = vector.load %arg13[%c0_168, %c0_169] : memref<2x32xf32, #tpu.memory_space<vmem>>, vector<2x32xf32>
    tpu.vector_store %arg13[%c0_168, %c0_169], %298 {strides = array<i32>} : memref<2x32xf32, #tpu.memory_space<vmem>>, vector<2x32xf32>,
    %c0_170 = arith.constant 0 : index
    %c32_171 = arith.constant 32 : index
    %302 = vector.load %arg12[%c0_170, %c32_171] : memref<2x64xf32, #tpu.memory_space<vmem>>, vector<2x32xf32>
    tpu.vector_store %arg12[%c0_170, %c32_171], %300 {strides = array<i32>} : memref<2x64xf32, #tpu.memory_space<vmem>>, vector<2x32xf32>,
    %cst_172 = arith.constant dense<0.000000e+00> : vector<2x128xf32>
    %303 = tpu.matmul %300, %14, %cst_172 {dimension_numbers = #tpu.dot_dimension_numbers<[1], [0], [0], [1], [0, 0, 1, 1], [], []>} : vector<2x32xf32>, vector<32x128xf32>, vector<2x128xf32> -> vector<2x128xf32>
    %304 = vector.broadcast %15 : vector<1x128xf32> to vector<2x128xf32>
    %305 = arith.addf %303, %304 : vector<2x128xf32>
    %306 = arith.index_cast %c6_i32 : i32 to index
    %c0_173 = arith.constant 0 : index
    %c0_174 = arith.constant 0 : index
    %307 = vector.load %arg9[%306, %c0_173, %c0_174] : memref<8x2x128xf32, #tpu.memory_space<vmem>>, vector<1x2x128xf32>
    %308 = vector.shape_cast %307 : vector<1x2x128xf32> to vector<2x128xf32>
    %309 = vector.shape_cast %305 : vector<2x128xf32> to vector<1x2x128xf32>
    tpu.vector_store %arg9[%306, %c0_173, %c0_174], %309 {strides = array<i32>} : memref<8x2x128xf32, #tpu.memory_space<vmem>>, vector<1x2x128xf32>,
    %c7_i32 = arith.constant 7 : i32
    %310 = arith.index_cast %c7_i32 : i32 to index
    %c0_175 = arith.constant 0 : index
    %311 = memref.load %arg1[%310, %c0_175] : memref<8x2xi32, #tpu.memory_space<smem>>
    %312 = arith.index_cast %311 : i32 to index
    %c0_176 = arith.constant 0 : index
    %c0_177 = arith.constant 0 : index
    %313 = vector.load %arg2[%312, %c0_176, %c0_177] : memref<64x1x32xf32, #tpu.memory_space<vmem>>, vector<1x1x32xf32>
    %314 = vector.shape_cast %313 : vector<1x1x32xf32> to vector<1x32xf32>
    %c0_178 = arith.constant 0 : index
    %c0_179 = arith.constant 0 : index
    %315 = vector.load %arg12[%c0_178, %c0_179] : memref<2x64xf32, #tpu.memory_space<vmem>>, vector<1x32xf32>
    tpu.vector_store %arg12[%c0_178, %c0_179], %314 {strides = array<i32>} : memref<2x64xf32, #tpu.memory_space<vmem>>, vector<1x32xf32>,
    %316 = arith.index_cast %c7_i32 : i32 to index
    %c1_180 = arith.constant 1 : index
    %317 = memref.load %arg1[%316, %c1_180] : memref<8x2xi32, #tpu.memory_space<smem>>
    %318 = arith.index_cast %317 : i32 to index
    %c0_181 = arith.constant 0 : index
    %c0_182 = arith.constant 0 : index
    %319 = vector.load %arg2[%318, %c0_181, %c0_182] : memref<64x1x32xf32, #tpu.memory_space<vmem>>, vector<1x1x32xf32>
    %320 = vector.shape_cast %319 : vector<1x1x32xf32> to vector<1x32xf32>
    %c1_183 = arith.constant 1 : index
    %c0_184 = arith.constant 0 : index
    %321 = vector.load %arg12[%c1_183, %c0_184] : memref<2x64xf32, #tpu.memory_space<vmem>>, vector<1x32xf32>
    tpu.vector_store %arg12[%c1_183, %c0_184], %320 {strides = array<i32>} : memref<2x64xf32, #tpu.memory_space<vmem>>, vector<1x32xf32>,
    %c0_185 = arith.constant 0 : index
    %c0_186 = arith.constant 0 : index
    %322 = vector.load %arg12[%c0_185, %c0_186] : memref<2x64xf32, #tpu.memory_space<vmem>>, vector<2x64xf32>
    %cst_187 = arith.constant dense<0.000000e+00> : vector<2x128xf32>
    %323 = tpu.matmul %322, %12, %cst_187 {dimension_numbers = #tpu.dot_dimension_numbers<[1], [0], [0], [1], [0, 0, 1, 1], [], []>} : vector<2x64xf32>, vector<64x128xf32>, vector<2x128xf32> -> vector<2x128xf32>
    %324 = vector.broadcast %13 : vector<1x128xf32> to vector<2x128xf32>
    %325 = arith.addf %323, %324 : vector<2x128xf32>
    %326 = math.tanh %325 : vector<2x128xf32>
    %327 = arith.negf %325 : vector<2x128xf32>
    %328 = math.exp %327 : vector<2x128xf32>
    %cst_188 = arith.constant 1.000000e+00 : f32
    %329 = vector.broadcast %cst_188 : f32 to vector<2x128xf32>
    %330 = arith.addf %329, %328 : vector<2x128xf32>
    %331 = arith.divf %329, %330 : vector<2x128xf32>
    %332 = arith.select %11, %326, %331 : vector<2x128xi1>, vector<2x128xf32>
    %333 = vector.extract_strided_slice %332 {offsets = [0, 0], sizes = [2, 32], strides = [1, 1]} : vector<2x128xf32> to vector<2x32xf32>
    %334 = vector.extract_strided_slice %332 {offsets = [0, 32], sizes = [2, 32], strides = [1, 1]} : vector<2x128xf32> to vector<2x32xf32>
    %335 = vector.extract_strided_slice %332 {offsets = [0, 64], sizes = [2, 32], strides = [1, 1]} : vector<2x128xf32> to vector<2x32xf32>
    %336 = vector.extract_strided_slice %332 {offsets = [0, 96], sizes = [2, 32], strides = [1, 1]} : vector<2x128xf32> to vector<2x32xf32>
    %c0_189 = arith.constant 0 : index
    %c0_190 = arith.constant 0 : index
    %337 = vector.load %arg13[%c0_189, %c0_190] : memref<2x32xf32, #tpu.memory_space<vmem>>, vector<2x32xf32>
    %338 = arith.mulf %334, %337 : vector<2x32xf32>
    %339 = arith.mulf %333, %335 : vector<2x32xf32>
    %340 = arith.addf %338, %339 : vector<2x32xf32>
    %341 = math.tanh %340 : vector<2x32xf32>
    %342 = arith.mulf %336, %341 : vector<2x32xf32>
    %c0_191 = arith.constant 0 : index
    %c0_192 = arith.constant 0 : index
    %343 = vector.load %arg13[%c0_191, %c0_192] : memref<2x32xf32, #tpu.memory_space<vmem>>, vector<2x32xf32>
    tpu.vector_store %arg13[%c0_191, %c0_192], %340 {strides = array<i32>} : memref<2x32xf32, #tpu.memory_space<vmem>>, vector<2x32xf32>,
    %c0_193 = arith.constant 0 : index
    %c32_194 = arith.constant 32 : index
    %344 = vector.load %arg12[%c0_193, %c32_194] : memref<2x64xf32, #tpu.memory_space<vmem>>, vector<2x32xf32>
    tpu.vector_store %arg12[%c0_193, %c32_194], %342 {strides = array<i32>} : memref<2x64xf32, #tpu.memory_space<vmem>>, vector<2x32xf32>,
    %cst_195 = arith.constant dense<0.000000e+00> : vector<2x128xf32>
    %345 = tpu.matmul %342, %14, %cst_195 {dimension_numbers = #tpu.dot_dimension_numbers<[1], [0], [0], [1], [0, 0, 1, 1], [], []>} : vector<2x32xf32>, vector<32x128xf32>, vector<2x128xf32> -> vector<2x128xf32>
    %346 = vector.broadcast %15 : vector<1x128xf32> to vector<2x128xf32>
    %347 = arith.addf %345, %346 : vector<2x128xf32>
    %348 = arith.index_cast %c7_i32 : i32 to index
    %c0_196 = arith.constant 0 : index
    %c0_197 = arith.constant 0 : index
    %349 = vector.load %arg9[%348, %c0_196, %c0_197] : memref<8x2x128xf32, #tpu.memory_space<vmem>>, vector<1x2x128xf32>
    %350 = vector.shape_cast %349 : vector<1x2x128xf32> to vector<2x128xf32>
    %351 = vector.shape_cast %347 : vector<2x128xf32> to vector<1x2x128xf32>
    tpu.vector_store %arg9[%348, %c0_196, %c0_197], %351 {strides = array<i32>} : memref<8x2x128xf32, #tpu.memory_space<vmem>>, vector<1x2x128xf32>,
    %c8_i32 = arith.constant 8 : i32
    %c0_198 = arith.constant 0 : index
    %c32_199 = arith.constant 32 : index
    %352 = vector.load %arg12[%c0_198, %c32_199] : memref<2x64xf32, #tpu.memory_space<vmem>>, vector<2x32xf32>
    %c0_200 = arith.constant 0 : index
    %c0_201 = arith.constant 0 : index
    %c0_202 = arith.constant 0 : index
    %353 = vector.load %arg10[%c0_200, %c0_201, %c0_202] : memref<1x2x32xf32, #tpu.memory_space<vmem>>, vector<1x2x32xf32>
    %354 = vector.shape_cast %353 : vector<1x2x32xf32> to vector<2x32xf32>
    %355 = vector.shape_cast %352 : vector<2x32xf32> to vector<1x2x32xf32>
    tpu.vector_store %arg10[%c0_200, %c0_201, %c0_202], %355 {strides = array<i32>} : memref<1x2x32xf32, #tpu.memory_space<vmem>>, vector<1x2x32xf32>,
    %c0_203 = arith.constant 0 : index
    %c0_204 = arith.constant 0 : index
    %356 = vector.load %arg13[%c0_203, %c0_204] : memref<2x32xf32, #tpu.memory_space<vmem>>, vector<2x32xf32>
    %c0_205 = arith.constant 0 : index
    %c0_206 = arith.constant 0 : index
    %c0_207 = arith.constant 0 : index
    %357 = vector.load %arg11[%c0_205, %c0_206, %c0_207] : memref<1x2x32xf32, #tpu.memory_space<vmem>>, vector<1x2x32xf32>
    %358 = vector.shape_cast %357 : vector<1x2x32xf32> to vector<2x32xf32>
    %359 = vector.shape_cast %356 : vector<2x32xf32> to vector<1x2x32xf32>
    tpu.vector_store %arg11[%c0_205, %c0_206, %c0_207], %359 {strides = array<i32>} : memref<1x2x32xf32, #tpu.memory_space<vmem>>, vector<1x2x32xf32>,
    return
  }
  func.func @transform_0(%arg0: i32, %arg1: memref<8x2xi32, #tpu.memory_space<smem>>) -> (i32, i32, i32) {
    %c0_i32 = arith.constant 0 : i32
    %c0_i32_0 = arith.constant 0 : i32
    %c0_i32_1 = arith.constant 0 : i32
    %c0_i32_2 = arith.constant 0 : i32
    return %c0_i32, %c0_i32_0, %c0_i32_1 : i32, i32, i32
  }
  func.func @transform_1(%arg0: i32, %arg1: memref<8x2xi32, #tpu.memory_space<smem>>) -> (i32, i32) {
    %c0_i32 = arith.constant 0 : i32
    %c0_i32_0 = arith.constant 0 : i32
    %c0_i32_1 = arith.constant 0 : i32
    return %c0_i32, %c0_i32_0 : i32, i32
  }
  func.func @transform_2(%arg0: i32, %arg1: memref<8x2xi32, #tpu.memory_space<smem>>) -> (i32, i32) {
    %c0_i32 = arith.constant 0 : i32
    %c0_i32_0 = arith.constant 0 : i32
    %c0_i32_1 = arith.constant 0 : i32
    return %c0_i32, %c0_i32_0 : i32, i32
  }
  func.func @transform_3(%arg0: i32, %arg1: memref<8x2xi32, #tpu.memory_space<smem>>) -> (i32, i32) {
    %c0_i32 = arith.constant 0 : i32
    %c0_i32_0 = arith.constant 0 : i32
    %c0_i32_1 = arith.constant 0 : i32
    return %c0_i32, %c0_i32_0 : i32, i32
  }
  func.func @transform_4(%arg0: i32, %arg1: memref<8x2xi32, #tpu.memory_space<smem>>) -> (i32, i32) {
    %c0_i32 = arith.constant 0 : i32
    %c0_i32_0 = arith.constant 0 : i32
    %c0_i32_1 = arith.constant 0 : i32
    return %c0_i32, %c0_i32_0 : i32, i32
  }
  func.func @transform_5(%arg0: i32, %arg1: memref<8x2xi32, #tpu.memory_space<smem>>) -> (i32, i32, i32) {
    %c0_i32 = arith.constant 0 : i32
    %c0_i32_0 = arith.constant 0 : i32
    %c0_i32_1 = arith.constant 0 : i32
    %c0_i32_2 = arith.constant 0 : i32
    return %c0_i32, %c0_i32_0, %c0_i32_1 : i32, i32, i32
  }
  func.func @transform_6(%arg0: i32, %arg1: memref<8x2xi32, #tpu.memory_space<smem>>) -> (i32, i32, i32) {
    %c0_i32 = arith.constant 0 : i32
    %c0_i32_0 = arith.constant 0 : i32
    %c0_i32_1 = arith.constant 0 : i32
    %c0_i32_2 = arith.constant 0 : i32
    return %c0_i32, %c0_i32_0, %c0_i32_1 : i32, i32, i32
  }
  func.func @transform_7(%arg0: i32, %arg1: memref<8x2xi32, #tpu.memory_space<smem>>) -> (i32, i32, i32) {
    %c0_i32 = arith.constant 0 : i32
    %c0_i32_0 = arith.constant 0 : i32
    %c0_i32_1 = arith.constant 0 : i32
    %c0_i32_2 = arith.constant 0 : i32
    return %c0_i32, %c0_i32_0, %c0_i32_1 : i32, i32, i32
  }
  func.func @transform_8(%arg0: i32, %arg1: memref<8x2xi32, #tpu.memory_space<smem>>) -> (i32, i32, i32) {
    %c0_i32 = arith.constant 0 : i32
    %c0_i32_0 = arith.constant 0 : i32
    %c0_i32_1 = arith.constant 0 : i32
    %c0_i32_2 = arith.constant 0 : i32
    return %c0_i32, %c0_i32_0, %c0_i32_1 : i32, i32, i32
  }
  func.func @transform_9(%arg0: i32, %arg1: memref<8x2xi32, #tpu.memory_space<smem>>) -> (i32, i32, i32) {
    %c0_i32 = arith.constant 0 : i32
    %c0_i32_0 = arith.constant 0 : i32
    %c0_i32_1 = arith.constant 0 : i32
    %c0_i32_2 = arith.constant 0 : i32
    return %c0_i32, %c0_i32_0, %c0_i32_1 : i32, i32, i32
  }
}

</mosaic_0001>

<bundles_post_ra>
// kernel: rnnlm_forward.1
= control target key start
LH: loop header
LB: loop body
LE: loop exit
PB: predicated region body
PF: predicated region fallthrough
CT: control target
= control target key end

     0   :  { %s2921_s0 = inlined_call_operand.vmem [shape: s32[8,2], index: 0, kind: input, shape index: {}]   ;;  %s2922_s1 = inlined_call_operand.vmem [shape: f32[64,1,32], index: 1, kind: input, shape index: {}]   ;;  %s2923_s2 = inlined_call_operand.vmem [shape: f32[64,128], index: 2, kind: input, shape index: {}]   ;;  %s2924_s3 = inlined_call_operand.vmem [shape: f32[1,128], index: 3, kind: input, shape index: {}]   ;;  %s2925_s4 = inlined_call_operand.vmem [shape: f32[32,128], index: 4, kind: input, shape index: {}]   ;;  %s2926_s5 = inlined_call_operand.vmem [shape: f32[1,128], index: 5, kind: input, shape index: {}]   ;;  %s2927_s6 = inlined_call_operand.vmem [shape: f32[1,2,32], index: 6, kind: input, shape index: {}]   ;;  %s2928_s7 = inlined_call_operand.vmem [shape: f32[1,2,32], index: 7, kind: input, shape index: {}]   ;;  %s2929_s8 = inlined_call_operand.hbm [shape: f32[8,2,128], index: 8, kind: output, shape index: {0}]   ;;  %s2930_s9 = inlined_call_operand.hbm [shape: f32[1,2,32], index: 9, kind: output, shape index: {1}]   ;;  %s2931_s10 = inlined_call_operand.hbm [shape: f32[1,2,32], index: 10, kind: output, shape index: {2}]  }
   0x1   :  { %s16_s15 = sshll.u32 %s2921_s0, 4  ;;  %s17_s15 = int_to_ptr.vmem [resolvable:$true] %s16_s15 }
   0x2   :  { %s2344_s16 = scalar_lea.vmem %s17_s15, 128  ;;  %p2349_p1 = scmp.lt.s32.totalorder %s17_s15, %s17_s15 }
   0x3   :  { %p2345_p0 = scmp.ne.s32.totalorder %s17_s15, %s2344_s16  ;;  %p2350_p2 = scmp.lt.s32.totalorder %s2344_s16, %s2344_s16 }
   0x5   :  { %p2351_p3 = por %p2350_p2, %p2349_p1 }
   0x7   :  { %p2352_p4 = pnand %p2351_p3, %p2345_p0 }
   0x9   :  { %2355 = shalt.err (!%p2352_p4)  }
   0xa   :  { %s2428_s17 = smov [#allocation5]  }
   0xb   :  { %19 = dma.vmem_to_smem %s17_s15, 128, %s2428_s17, [#allocation4] }
   0xc   :  { %2422 = dma.done.wait [#allocation4], 128 }
   0xd   :  { %2423 = vsyncadd [#allocation4], 4294967168 }
   0xe   :  { %21 = sfence }
   0xf   :  { %22 = vsyncpa [#allocation7], 0  ;;  %v38_v0 = vld [vmem:[%s2927_s6] sm:$0x3]  ;;  %v54_v2 = vld [vmem:[%s2923_s2 + $0x8] sm:$0xff]  ;;  %s2429_s23 = smov 32  }
  0x10   :  { %v53_v1 = vld [vmem:[%s2923_s2] sm:$0xff]  ;;  %40 = vrot.lane.b32.xlu0 %v38_v0, %s2429_s23  ;;  %v2430_v3 = vmov 0.0|0.0   ;;  %v55_v5 = vld [vmem:[%s2923_s2 + $0x10] sm:$0xff]  ;;  %v56_v6 = vld [vmem:[%s2923_s2 + $0x18] sm:$0xff]  ;;  %vm46_vm0 = vcmask 254976   ;;  %vm2431_vm1 = vmmov 0  }
  0x11   :  { %2125 = vmatprep.subr.bf16.mxu0 %v2430_v3  ;;  %v2508_v4 = vpack.c.bf16 %v54_v2, %v53_v1  ;;  %2137 = vmatprep.subr.bf16.mxu1 %v2430_v3  ;;  %v2518_v7 = vpack.c.bf16 %v56_v6, %v55_v5  ;;  %v45_v8 = vld [vmem:[%s2928_s7] sm:$0x3]  ;;  %v58_v10 = vld [vmem:[%s2923_s2 + $0x28] sm:$0xff]  ;;  %v2432_v11 = vmov 0.0  }
  0x12   :  { %v57_v9 = vld [vmem:[%s2923_s2 + $0x20] sm:$0xff]  ;;  %1901 = vmatprep.mubr.msk.f32.mxu0 %vm2431_vm1, %v2432_v11  ;;  %47 = vst.msk [vmem:[#allocation3] sm:$0x3] %vm46_vm0, %v45_v8 }
  0x13   :  { %2127 = vmatpush3.bf16.msra.mxu0 %v2508_v4 }
  0x14   :  { %2128 = vmatprep.subr.bf16.mxu0 %v2430_v3 }
  0x15   :  { %23 = vsyncpa [#allocation9], 0  ;;  %1912 = vmatprep.mubr.msk.f32.mxu1 %vm2431_vm1, %v2432_v11  ;;  %v2536_v12 = vpack.c.bf16 %v58_v10, %v57_v9  ;;  %v59_v13 = vld [vmem:[%s2923_s2 + $0x30] sm:$0xff]  ;;  %v60_v14 = vld [vmem:[%s2923_s2 + $0x38] sm:$0xff]  ;;  %s67_s16 = sld [smem:[#allocation5]]  ;;  %s1732_s17 = sld [smem:[#allocation5 + $0x1]]  ;;  %v48_v27 = vlaneseq }
  0x16   :  { %v2546_v15 = vpack.c.bf16 %v60_v14, %v59_v13  ;;  %vm43_vm2 = vcmask 517376   ;;  %vm70_vm3 = vcmask 253952   ;;  %vm83_vm4 = vcmask 523264   ;;  %v2567_v21 = vld [vmem:[%s2924_s3] ss:$0 sm:$0xff]  ;;  %s2433_s3 = smov 64  }
  0x17   :  { %2130 = vmatpush3.bf16.msra.mxu0 %v2518_v7  ;;  %v49_v29 = vand.u32 127, %v48_v27  ;;  %v62_v40 = vld [vmem:[%s2925_s4] sm:$0xff]  ;;  %v63_v41 = vld [vmem:[%s2925_s4 + $0x8] sm:$0xff]  ;;  %v64_v42 = vld [vmem:[%s2925_s4 + $0x10] sm:$0xff]  ;;  %s1738_s12 = sld [smem:[#allocation5 + $0x80]]  ;;  %s1739_s7 = sld [smem:[#allocation5 + $0x81]] }
  0x18   :  { %2131 = vmatprep.subr.bf16.mxu0 %v2430_v3  ;;  %v2587_v43 = vpack.c.bf16 %v63_v41, %v62_v40  ;;  %v65_v44 = vld [vmem:[%s2925_s4 + $0x18] sm:$0xff]  ;;  %s2434_s4 = smov 96   ;;  %vm205_vm8 = vcmask 261120   ;;  %v2638_v56 = vld [vmem:[%s2926_s5] ss:$0 sm:$0xff]  ;;  %s1743_s5 = sld [smem:[#allocation5 + $0x100]] }
  0x19   :  { %v165_v16 = vld [vmem:[#allocation3] sm:$0x3]  ;;  %vm50_vm5 = vcmp.ge.s32.totalorder %v49_v29, 64  ;;  %vm51_vm6 = vcmp.lt.s32.totalorder %v49_v29, 96  ;;  %v2593_v45 = vpack.c.bf16 %v65_v44, %v64_v42  ;;  %s1744_s2 = sld [smem:[#allocation5 + $0x101]]  ;;  %s1748_s26 = sld [smem:[#allocation5 + $0x180]] }
  0x1a   :  { %167 = vrot.lane.b32.xlu1 %v165_v16, %s2429_s23  ;;  %vm2570_vm7 = vmand %vm50_vm5, %vm51_vm6  ;;  %2139 = vmatpush3.bf16.msra.mxu1 %v2587_v43  ;;  %s1749_s27 = sld [smem:[#allocation5 + $0x181]]  ;;  %s1753_s13 = sld [smem:[#allocation5 + $0x200]] }
  0x1b   :  { %2133 = vmatpush3.bf16.msra.mxu0 %v2536_v12  ;;  %s68_s20 = scalar_lea.vmem %s2922_s1, %s67_s16  ;;  %s73_s21 = scalar_lea.vmem %s2922_s1, %s1732_s17  ;;  %2140 = vmatprep.subr.bf16.mxu1 %v2430_v3 }
  0x1c   :  { %2134 = vmatprep.subr.bf16.mxu0 %v2430_v3  ;;  %v69_v17 = vld [vmem:[%s68_s20] sm:$0x1]  ;;  %s1754_s14 = sld [smem:[#allocation5 + $0x201]] }
  0x1d   :  { %v74_v18 = vld [vmem:[%s73_s21] sm:$0x1]  ;;  %s280_s15 = scalar_lea.vmem %s2922_s1, %s1738_s12  ;;  %s284_s18 = scalar_lea.vmem %s2922_s1, %s1739_s7 }
  0x1e   :  { %2142 = vmatpush3.bf16.msra.mxu1 %v2593_v45  ;;  %v281_v49 = vld [vmem:[%s280_s15] sm:$0x1]  ;;  %s478_s22 = scalar_lea.vmem %s2922_s1, %s1743_s5  ;;  %s1758_s5 = sld [smem:[#allocation5 + $0x280]] }
  0x1f   :  { %2136 = vmatpush3.bf16.msra.mxu0 %v2546_v15  ;;  %2143 = vmatprep.subr.bf16.mxu1 %v2430_v3  ;;  %v285_v50 = vld [vmem:[%s284_s18] sm:$0x1]  ;;  %s482_s6 = scalar_lea.vmem %s2922_s1, %s1744_s2  ;;  %s676_s30 = scalar_lea.vmem %s2922_s1, %s1748_s26 }
  0x20   :  { %2155 = vmatprep.subr.bf16.mxu0 %v2430_v3  ;;  %s680_s7 = scalar_lea.vmem %s2922_s1, %s1749_s27  ;;  %s874_s17 = scalar_lea.vmem %s2922_s1, %s1753_s13 }
  0x21   :  { %s1759_s2 = sld [smem:[#allocation5 + $0x281]]  ;;  %s1763_s26 = sld [smem:[#allocation5 + $0x300]] }
  0x22   :  { %s878_s20 = scalar_lea.vmem %s2922_s1, %s1754_s14  ;;  %s1764_s27 = sld [smem:[#allocation5 + $0x301]] }
  0x23   :  { %s1768_s13 = sld [smem:[#allocation5 + $0x380]]  ;;  %s1769_s14 = sld [smem:[#allocation5 + $0x381]] }
  0x82   :  { %v41_v19 = vpop.permute.xlu0 %40 }
  0x83   :  { %44 = vst.msk [vmem:[#allocation2] sm:$0x3] %vm43_vm2, %v41_v19 }
  0x84   :  { %71 = vst.msk [vmem:[#allocation2] sm:$0x1] %vm70_vm3, %v69_v17  ;;  %75 = vst.msk [vmem:[#allocation2 + $0x1] sm:$0x1] %vm70_vm3, %v74_v18 }
  0x8b   :  { %v76_v20 = vld [vmem:[#allocation2] sm:$0x3] }
  0x8c   :  { %1902 = vmatmul.mubr.msk.f32.vlgmr.msra.gmra.mrb[0].mxu0 %vm83_vm4, %v76_v20  ;;  %v168_v36 = vpop.permute.xlu1 %167  ;;  %v479_v20 = vld [vmem:[%s478_s22] sm:$0x1]  ;;  %s1072_s22 = scalar_lea.vmem %s2922_s1, %s1758_s5  ;;  %s2436_s5 = smov [#allocation10]  }
  0x8d   :  { %1942 = vmatprep.mubr.msk.f32.mxu0 %vm2431_vm1, %v2432_v11  ;;  %2157 = vmatpush3.bf16.msra.mxu0 %v2587_v43 }
  0x8e   :  { %2158 = vmatprep.subr.bf16.mxu0 %v2430_v3 }
  0x91   :  { %2160 = vmatpush3.bf16.msra.mxu0 %v2593_v45 }
  0x92   :  { %2161 = vmatprep.subr.bf16.mxu0 %v2430_v3 }
 0x15f   :  { %v153_v22 = vpop.f32.mrb[0].mxu0 }
 0x160   :  { %v154_v23 = vadd.f32 %v2567_v21, %v153_v22  ;;  %v1903_v24 = vpop.f32.mrb[1].mxu0  ;;  %v483_v22 = vld [vmem:[%s482_s6] sm:$0x1]  ;;  %s1076_s6 = scalar_lea.vmem %s2922_s1, %s1759_s2  ;;  %s1701_s2 = sshll.u32 %s2436_s5, 4  ;;  %s1702_s2 = int_to_ptr.vmem [resolvable:$true] %s1701_s2 }
 0x162   :  { %v1735_v25 = vmul.f32 -1.442695, %v154_v23 }
 0x164   :  { %2280 = vpow2.f32 %v1735_v25 }
 0x165   :  { %2282 = vtanh.f32 %v154_v23 }
 0x16e   :  { %v2281_v26 = vpop.eup %2280 }
 0x16f   :  { %v161_v28 = vadd.f32 1.0, %v2281_v26  ;;  %v2283_v31 = vpop.eup %2282 }
 0x171   :  { %2284 = vrcp.f32 %v161_v28 }
 0x17b   :  { %v2285_v32 = vpop.eup %2284 }
 0x17c   :  { %v164_v33 = vsel %vm2570_vm7, %v2283_v31, %v2285_v32 }
 0x17d   :  { %172 = vrot.lane.b32.xlu0 %v164_v33, %s2433_s3  ;;  %v170_v37 = vmul.f32 %v168_v36, %v164_v33 }
 0x1ef   :  { %v173_v34 = vpop.permute.xlu0 %172 }
 0x1f0   :  { %v175_v35 = vmul.f32 %v173_v34, %v164_v33 }
 0x1f2   :  { %177 = vrot.lane.b32.xlu1 %v175_v35, %s2429_s23 }
 0x264   :  { %v178_v38 = vpop.permute.xlu1 %177 }
 0x265   :  { %v180_v39 = vadd.f32 %v178_v38, %v170_v37 }
 0x267   :  { %2286 = vtanh.f32 %v180_v39 }
 0x271   :  { %v2287_v46 = vpop.eup %2286 }
 0x272   :  { %183 = vrot.lane.b32.xlu0 %v2287_v46, %s2433_s3 }
 0x2e4   :  { %v184_v47 = vpop.permute.xlu0 %183 }
 0x2e5   :  { %v186_v48 = vmul.f32 %v184_v47, %v164_v33 }
 0x2e7   :  { %193 = vrot.lane.b32.xlu0 %v186_v48, %s2433_s3  ;;  %203 = vrot.lane.b32.xlu1 %v186_v48, %s2429_s23 }
 0x2eb   :  { %188 = vrot.lane.b32.xlu1 %v180_v39, %s2434_s4 }
 0x359   :  { %v194_v51 = vpop.permute.xlu0 %193  ;;  %v204_v52 = vpop.permute.xlu1 %203 }
 0x35a   :  { %196 = vst.msk [vmem:[#allocation2] sm:$0x3] %vm43_vm2, %v194_v51  ;;  %1913 = vmatmul.mubr.msk.f32.vlgmr.msra.gmra.mrb[0].mxu1 %vm205_vm8, %v204_v52  ;;  %v677_v52 = vld [vmem:[%s676_s30] sm:$0x1]  ;;  %s1270_s30 = scalar_lea.vmem %s2922_s1, %s1763_s26 }
 0x35b   :  { %282 = vst.msk [vmem:[#allocation2] sm:$0x1] %vm70_vm3, %v281_v49  ;;  %286 = vst.msk [vmem:[#allocation2 + $0x1] sm:$0x1] %vm70_vm3, %v285_v50  ;;  %2145 = vmatpush3.bf16.msra.mxu1 %v2508_v4  ;;  %1931 = vmatprep.mubr.msk.f32.mxu1 %vm2431_vm1, %v2432_v11 }
 0x35c   :  { %2146 = vmatprep.subr.bf16.mxu1 %v2430_v3 }
 0x35d   :  { %v189_v53 = vpop.permute.xlu1 %188 }
 0x35e   :  { %191 = vst.msk [vmem:[#allocation3] sm:$0x3] %vm46_vm0, %v189_v53  ;;  %v681_v53 = vld [vmem:[%s680_s7] sm:$0x1]  ;;  %s1274_s7 = scalar_lea.vmem %s2922_s1, %s1764_s27 }
 0x35f   :  { %2148 = vmatpush3.bf16.msra.mxu1 %v2518_v7 }
 0x360   :  { %2149 = vmatprep.subr.bf16.mxu1 %v2430_v3 }
 0x362   :  { %v287_v55 = vld [vmem:[#allocation2] sm:$0x3] }
 0x363   :  { %2151 = vmatpush3.bf16.msra.mxu1 %v2536_v12 }
 0x364   :  { %2152 = vmatprep.subr.bf16.mxu1 %v2430_v3 }
 0x365   :  { %v369_v54 = vld [vmem:[#allocation3] sm:$0x3] }
 0x366   :  { %371 = vrot.lane.b32.xlu1 %v369_v54, %s2429_s23 }
 0x367   :  { %2154 = vmatpush3.bf16.msra.mxu1 %v2546_v15 }
 0x368   :  { %2173 = vmatprep.subr.bf16.mxu1 %v2430_v3 }
 0x36a   :  { %1932 = vmatmul.mubr.msk.f32.vlgmr.msra.gmra.mrb[2].mxu1 %vm83_vm4, %v287_v55 }
 0x36b   :  { %2175 = vmatpush3.bf16.msra.mxu1 %v2587_v43  ;;  %1972 = vmatprep.mubr.msk.f32.mxu1 %vm2431_vm1, %v2432_v11 }
 0x36c   :  { %2176 = vmatprep.subr.bf16.mxu1 %v2430_v3 }
 0x36f   :  { %2178 = vmatpush3.bf16.msra.mxu1 %v2593_v45 }
 0x370   :  { %2179 = vmatprep.subr.bf16.mxu1 %v2430_v3 }
 0x3d8   :  { %v372_v10 = vpop.permute.xlu1 %371 }
 0x42d   :  { %v274_v57 = vpop.f32.mrb[0].mxu1 }
 0x42e   :  { %v275_v58 = vadd.f32 %v2638_v56, %v274_v57  ;;  %v1914_v59 = vpop.f32.mrb[1].mxu1 }
 0x430   :  { %278 = vst [vmem:[#allocation6] sm:$0x3] %v275_v58 }
 0x43d   :  { %v357_v60 = vpop.f32.mrb[2].mxu1 }
 0x43e   :  { %v358_v61 = vadd.f32 %v2567_v21, %v357_v60  ;;  %v1933_v62 = vpop.f32.mrb[3].mxu1 }
 0x440   :  { %v1741_v63 = vmul.f32 -1.442695, %v358_v61 }
 0x442   :  { %2288 = vpow2.f32 %v1741_v63 }
 0x443   :  { %2290 = vtanh.f32 %v358_v61 }
 0x44c   :  { %v2289_v0 = vpop.eup %2288 }
 0x44d   :  { %v365_v1 = vadd.f32 1.0, %v2289_v0  ;;  %v2291_v2 = vpop.eup %2290 }
 0x44f   :  { %2292 = vrcp.f32 %v365_v1 }
 0x459   :  { %v2293_v5 = vpop.eup %2292 }
 0x45a   :  { %v368_v6 = vsel %vm2570_vm7, %v2291_v2, %v2293_v5 }
 0x45b   :  { %376 = vrot.lane.b32.xlu0 %v368_v6, %s2433_s3  ;;  %v374_v13 = vmul.f32 %v372_v10, %v368_v6 }
 0x4cd   :  { %v377_v8 = vpop.permute.xlu0 %376 }
 0x4ce   :  { %v379_v9 = vmul.f32 %v377_v8, %v368_v6 }
 0x4d0   :  { %381 = vrot.lane.b32.xlu0 %v379_v9, %s2429_s23 }
 0x542   :  { %v382_v14 = vpop.permute.xlu0 %381 }
 0x543   :  { %v384_v16 = vadd.f32 %v382_v14, %v374_v13 }
 0x545   :  { %2294 = vtanh.f32 %v384_v16 }
 0x54f   :  { %v2295_v17 = vpop.eup %2294 }
 0x550   :  { %387 = vrot.lane.b32.xlu1 %v2295_v17, %s2433_s3 }
 0x5c2   :  { %v388_v18 = vpop.permute.xlu1 %387 }
 0x5c3   :  { %v390_v19 = vmul.f32 %v388_v18, %v368_v6 }
 0x5c5   :  { %397 = vrot.lane.b32.xlu1 %v390_v19, %s2433_s3  ;;  %401 = vrot.lane.b32.xlu0 %v390_v19, %s2429_s23 }
 0x5c9   :  { %392 = vrot.lane.b32.xlu0 %v384_v16, %s2434_s4 }
 0x637   :  { %v398_v23 = vpop.permute.xlu1 %397  ;;  %v402_v24 = vpop.permute.xlu0 %401 }
 0x638   :  { %400 = vst.msk [vmem:[#allocation2] sm:$0x3] %vm43_vm2, %v398_v23  ;;  %1943 = vmatmul.mubr.msk.f32.vlgmr.msra.gmra.mrb[2].mxu0 %vm205_vm8, %v402_v24  ;;  %v875_v24 = vld [vmem:[%s874_s17] sm:$0x1]  ;;  %s1468_s17 = scalar_lea.vmem %s2922_s1, %s1768_s13 }
 0x639   :  { %480 = vst.msk [vmem:[#allocation2] sm:$0x1] %vm70_vm3, %v479_v20  ;;  %484 = vst.msk [vmem:[#allocation2 + $0x1] sm:$0x1] %vm70_vm3, %v483_v22  ;;  %2163 = vmatpush3.bf16.msra.mxu0 %v2508_v4  ;;  %1961 = vmatprep.mubr.msk.f32.mxu0 %vm2431_vm1, %v2432_v11 }
 0x63a   :  { %2164 = vmatprep.subr.bf16.mxu0 %v2430_v3 }
 0x63b   :  { %v393_v25 = vpop.permute.xlu0 %392 }
 0x63c   :  { %395 = vst.msk [vmem:[#allocation3] sm:$0x3] %vm46_vm0, %v393_v25  ;;  %v879_v25 = vld [vmem:[%s878_s20] sm:$0x1]  ;;  %s1472_s20 = scalar_lea.vmem %s2922_s1, %s1769_s14  ;;  %s2435_s1 = smov [#allocation8]  }
 0x63d   :  { %2166 = vmatpush3.bf16.msra.mxu0 %v2518_v7 }
 0x63e   :  { %2167 = vmatprep.subr.bf16.mxu0 %v2430_v3 }
 0x640   :  { %v485_v27 = vld [vmem:[#allocation2] sm:$0x3] }
 0x641   :  { %2169 = vmatpush3.bf16.msra.mxu0 %v2536_v12 }
 0x642   :  { %2170 = vmatprep.subr.bf16.mxu0 %v2430_v3 }
 0x643   :  { %v567_v26 = vld [vmem:[#allocation3] sm:$0x3] }
 0x644   :  { %569 = vrot.lane.b32.xlu0 %v567_v26, %s2429_s23 }
 0x645   :  { %2172 = vmatpush3.bf16.msra.mxu0 %v2546_v15 }
 0x646   :  { %2191 = vmatprep.subr.bf16.mxu0 %v2430_v3 }
 0x648   :  { %1962 = vmatmul.mubr.msk.f32.vlgmr.msra.gmra.mrb[4].mxu0 %vm83_vm4, %v485_v27 }
 0x649   :  { %2193 = vmatpush3.bf16.msra.mxu0 %v2587_v43  ;;  %2002 = vmatprep.mubr.msk.f32.mxu0 %vm2431_vm1, %v2432_v11 }
 0x64a   :  { %2194 = vmatprep.subr.bf16.mxu0 %v2430_v3 }
 0x64d   :  { %2196 = vmatpush3.bf16.msra.mxu0 %v2593_v45 }
 0x64e   :  { %2197 = vmatprep.subr.bf16.mxu0 %v2430_v3 }
 0x6b6   :  { %v570_v44 = vpop.permute.xlu0 %569 }
 0x70b   :  { %v471_v28 = vpop.f32.mrb[2].mxu0 }
 0x70c   :  { %v472_v29 = vadd.f32 %v2638_v56, %v471_v28  ;;  %v1944_v31 = vpop.f32.mrb[3].mxu0 }
 0x70e   :  { %476 = vst [vmem:[#allocation6 + $0x2] sm:$0x3] %v472_v29 }
 0x71b   :  { %v555_v32 = vpop.f32.mrb[4].mxu0 }
 0x71c   :  { %v556_v33 = vadd.f32 %v2567_v21, %v555_v32  ;;  %v1963_v34 = vpop.f32.mrb[5].mxu0 }
 0x71e   :  { %v1746_v35 = vmul.f32 -1.442695, %v556_v33 }
 0x720   :  { %2296 = vpow2.f32 %v1746_v35 }
 0x721   :  { %2298 = vtanh.f32 %v556_v33 }
 0x72a   :  { %v2297_v36 = vpop.eup %2296 }
 0x72b   :  { %v563_v37 = vadd.f32 1.0, %v2297_v36  ;;  %v2299_v38 = vpop.eup %2298 }
 0x72d   :  { %2300 = vrcp.f32 %v563_v37 }
 0x737   :  { %v2301_v39 = vpop.eup %2300 }
 0x738   :  { %v566_v40 = vsel %vm2570_vm7, %v2299_v38, %v2301_v39 }
 0x739   :  { %574 = vrot.lane.b32.xlu1 %v566_v40, %s2433_s3  ;;  %v572_v46 = vmul.f32 %v570_v44, %v566_v40 }
 0x7ab   :  { %v575_v41 = vpop.permute.xlu1 %574 }
 0x7ac   :  { %v577_v42 = vmul.f32 %v575_v41, %v566_v40 }
 0x7ae   :  { %579 = vrot.lane.b32.xlu1 %v577_v42, %s2429_s23 }
 0x820   :  { %v580_v47 = vpop.permute.xlu1 %579 }
 0x821   :  { %v582_v48 = vadd.f32 %v580_v47, %v572_v46 }
 0x823   :  { %2302 = vtanh.f32 %v582_v48 }
 0x82d   :  { %v2303_v49 = vpop.eup %2302 }
 0x82e   :  { %585 = vrot.lane.b32.xlu0 %v2303_v49, %s2433_s3 }
 0x8a0   :  { %v586_v50 = vpop.permute.xlu0 %585 }
 0x8a1   :  { %v588_v51 = vmul.f32 %v586_v50, %v566_v40 }
 0x8a3   :  { %595 = vrot.lane.b32.xlu0 %v588_v51, %s2433_s3  ;;  %599 = vrot.lane.b32.xlu1 %v588_v51, %s2429_s23 }
 0x8a7   :  { %590 = vrot.lane.b32.xlu1 %v582_v48, %s2434_s4 }
 0x915   :  { %v596_v54 = vpop.permute.xlu0 %595  ;;  %v600_v55 = vpop.permute.xlu1 %599 }
 0x916   :  { %598 = vst.msk [vmem:[#allocation2] sm:$0x3] %vm43_vm2, %v596_v54  ;;  %1973 = vmatmul.mubr.msk.f32.vlgmr.msra.gmra.mrb[4].mxu1 %vm205_vm8, %v600_v55  ;;  %v1073_v55 = vld [vmem:[%s1072_s22] sm:$0x1] }
 0x917   :  { %678 = vst.msk [vmem:[#allocation2] sm:$0x1] %vm70_vm3, %v677_v52  ;;  %682 = vst.msk [vmem:[#allocation2 + $0x1] sm:$0x1] %vm70_vm3, %v681_v53  ;;  %2181 = vmatpush3.bf16.msra.mxu1 %v2508_v4  ;;  %1991 = vmatprep.mubr.msk.f32.mxu1 %vm2431_vm1, %v2432_v11 }
 0x918   :  { %2182 = vmatprep.subr.bf16.mxu1 %v2430_v3 }
 0x919   :  { %v591_v57 = vpop.permute.xlu1 %590 }
 0x91a   :  { %593 = vst.msk [vmem:[#allocation3] sm:$0x3] %vm46_vm0, %v591_v57  ;;  %v1077_v57 = vld [vmem:[%s1076_s6] sm:$0x1] }
 0x91b   :  { %2184 = vmatpush3.bf16.msra.mxu1 %v2518_v7 }
 0x91c   :  { %2185 = vmatprep.subr.bf16.mxu1 %v2430_v3 }
 0x91e   :  { %v683_v59 = vld [vmem:[#allocation2] sm:$0x3] }
 0x91f   :  { %2187 = vmatpush3.bf16.msra.mxu1 %v2536_v12 }
 0x920   :  { %2188 = vmatprep.subr.bf16.mxu1 %v2430_v3 }
 0x921   :  { %v765_v58 = vld [vmem:[#allocation3] sm:$0x3] }
 0x922   :  { %767 = vrot.lane.b32.xlu1 %v765_v58, %s2429_s23 }
 0x923   :  { %2190 = vmatpush3.bf16.msra.mxu1 %v2546_v15 }
 0x924   :  { %2209 = vmatprep.subr.bf16.mxu1 %v2430_v3 }
 0x926   :  { %1992 = vmatmul.mubr.msk.f32.vlgmr.msra.gmra.mrb[6].mxu1 %vm83_vm4, %v683_v59 }
 0x927   :  { %2211 = vmatpush3.bf16.msra.mxu1 %v2587_v43  ;;  %2032 = vmatprep.mubr.msk.f32.mxu1 %vm2431_vm1, %v2432_v11 }
 0x928   :  { %2212 = vmatprep.subr.bf16.mxu1 %v2430_v3 }
 0x92b   :  { %2214 = vmatpush3.bf16.msra.mxu1 %v2593_v45 }
 0x92c   :  { %2215 = vmatprep.subr.bf16.mxu1 %v2430_v3 }
 0x994   :  { %v768_v16 = vpop.permute.xlu1 %767 }
 0x9e9   :  { %v669_v60 = vpop.f32.mrb[4].mxu1 }
 0x9ea   :  { %v670_v61 = vadd.f32 %v2638_v56, %v669_v60  ;;  %v1974_v62 = vpop.f32.mrb[5].mxu1 }
 0x9ec   :  { %674 = vst [vmem:[#allocation6 + $0x4] sm:$0x3] %v670_v61 }
 0x9f9   :  { %v753_v63 = vpop.f32.mrb[6].mxu1 }
 0x9fa   :  { %v754_v0 = vadd.f32 %v2567_v21, %v753_v63  ;;  %v1993_v1 = vpop.f32.mrb[7].mxu1 }
 0x9fc   :  { %v1751_v2 = vmul.f32 -1.442695, %v754_v0 }
 0x9fe   :  { %2304 = vpow2.f32 %v1751_v2 }
 0x9ff   :  { %2306 = vtanh.f32 %v754_v0 }
 0xa08   :  { %v2305_v5 = vpop.eup %2304 }
 0xa09   :  { %v761_v6 = vadd.f32 1.0, %v2305_v5  ;;  %v2307_v8 = vpop.eup %2306 }
 0xa0b   :  { %2308 = vrcp.f32 %v761_v6 }
 0xa15   :  { %v2309_v9 = vpop.eup %2308 }
 0xa16   :  { %v764_v10 = vsel %vm2570_vm7, %v2307_v8, %v2309_v9 }
 0xa17   :  { %772 = vrot.lane.b32.xlu0 %v764_v10, %s2433_s3  ;;  %v770_v17 = vmul.f32 %v768_v16, %v764_v10 }
 0xa89   :  { %v773_v13 = vpop.permute.xlu0 %772 }
 0xa8a   :  { %v775_v14 = vmul.f32 %v773_v13, %v764_v10 }
 0xa8c   :  { %777 = vrot.lane.b32.xlu0 %v775_v14, %s2429_s23 }
 0xafe   :  { %v778_v18 = vpop.permute.xlu0 %777 }
 0xaff   :  { %v780_v19 = vadd.f32 %v778_v18, %v770_v17 }
 0xb01   :  { %2310 = vtanh.f32 %v780_v19 }
 0xb0b   :  { %v2311_v20 = vpop.eup %2310 }
 0xb0c   :  { %783 = vrot.lane.b32.xlu1 %v2311_v20, %s2433_s3 }
 0xb7e   :  { %v784_v22 = vpop.permute.xlu1 %783 }
 0xb7f   :  { %v786_v23 = vmul.f32 %v784_v22, %v764_v10 }
 0xb81   :  { %793 = vrot.lane.b32.xlu1 %v786_v23, %s2433_s3  ;;  %797 = vrot.lane.b32.xlu0 %v786_v23, %s2429_s23 }
 0xb85   :  { %788 = vrot.lane.b32.xlu0 %v780_v19, %s2434_s4 }
 0xbf3   :  { %v794_v26 = vpop.permute.xlu1 %793  ;;  %v798_v27 = vpop.permute.xlu0 %797 }
 0xbf4   :  { %796 = vst.msk [vmem:[#allocation2] sm:$0x3] %vm43_vm2, %v794_v26  ;;  %2003 = vmatmul.mubr.msk.f32.vlgmr.msra.gmra.mrb[6].mxu0 %vm205_vm8, %v798_v27  ;;  %v1271_v27 = vld [vmem:[%s1270_s30] sm:$0x1] }
 0xbf5   :  { %876 = vst.msk [vmem:[#allocation2] sm:$0x1] %vm70_vm3, %v875_v24  ;;  %880 = vst.msk [vmem:[#allocation2 + $0x1] sm:$0x1] %vm70_vm3, %v879_v25  ;;  %2199 = vmatpush3.bf16.msra.mxu0 %v2508_v4  ;;  %2021 = vmatprep.mubr.msk.f32.mxu0 %vm2431_vm1, %v2432_v11 }
 0xbf6   :  { %2200 = vmatprep.subr.bf16.mxu0 %v2430_v3 }
 0xbf7   :  { %v789_v28 = vpop.permute.xlu0 %788 }
 0xbf8   :  { %791 = vst.msk [vmem:[#allocation3] sm:$0x3] %vm46_vm0, %v789_v28  ;;  %v1275_v28 = vld [vmem:[%s1274_s7] sm:$0x1] }
 0xbf9   :  { %2202 = vmatpush3.bf16.msra.mxu0 %v2518_v7 }
 0xbfa   :  { %2203 = vmatprep.subr.bf16.mxu0 %v2430_v3 }
 0xbfc   :  { %v881_v31 = vld [vmem:[#allocation2] sm:$0x3] }
 0xbfd   :  { %2205 = vmatpush3.bf16.msra.mxu0 %v2536_v12 }
 0xbfe   :  { %2206 = vmatprep.subr.bf16.mxu0 %v2430_v3 }
 0xbff   :  { %v963_v29 = vld [vmem:[#allocation3] sm:$0x3] }
 0xc00   :  { %965 = vrot.lane.b32.xlu0 %v963_v29, %s2429_s23 }
 0xc01   :  { %2208 = vmatpush3.bf16.msra.mxu0 %v2546_v15 }
 0xc02   :  { %2227 = vmatprep.subr.bf16.mxu0 %v2430_v3 }
 0xc04   :  { %2022 = vmatmul.mubr.msk.f32.vlgmr.msra.gmra.mrb[8].mxu0 %vm83_vm4, %v881_v31 }
 0xc05   :  { %2229 = vmatpush3.bf16.msra.mxu0 %v2587_v43  ;;  %2062 = vmatprep.mubr.msk.f32.mxu0 %vm2431_vm1, %v2432_v11 }
 0xc06   :  { %2230 = vmatprep.subr.bf16.mxu0 %v2430_v3 }
 0xc09   :  { %2232 = vmatpush3.bf16.msra.mxu0 %v2593_v45 }
 0xc0a   :  { %2233 = vmatprep.subr.bf16.mxu0 %v2430_v3 }
 0xc72   :  { %v966_v48 = vpop.permute.xlu0 %965 }
 0xcc7   :  { %v867_v32 = vpop.f32.mrb[6].mxu0 }
 0xcc8   :  { %v868_v33 = vadd.f32 %v2638_v56, %v867_v32  ;;  %v2004_v34 = vpop.f32.mrb[7].mxu0 }
 0xcca   :  { %872 = vst [vmem:[#allocation6 + $0x6] sm:$0x3] %v868_v33 }
 0xcd7   :  { %v951_v35 = vpop.f32.mrb[8].mxu0 }
 0xcd8   :  { %v952_v36 = vadd.f32 %v2567_v21, %v951_v35  ;;  %v2023_v37 = vpop.f32.mrb[9].mxu0 }
 0xcda   :  { %v1756_v38 = vmul.f32 -1.442695, %v952_v36 }
 0xcdc   :  { %2312 = vpow2.f32 %v1756_v38 }
 0xcdd   :  { %2314 = vtanh.f32 %v952_v36 }
 0xce6   :  { %v2313_v39 = vpop.eup %2312 }
 0xce7   :  { %v959_v40 = vadd.f32 1.0, %v2313_v39  ;;  %v2315_v41 = vpop.eup %2314 }
 0xce9   :  { %2316 = vrcp.f32 %v959_v40 }
 0xcf3   :  { %v2317_v42 = vpop.eup %2316 }
 0xcf4   :  { %v962_v44 = vsel %vm2570_vm7, %v2315_v41, %v2317_v42 }
 0xcf5   :  { %970 = vrot.lane.b32.xlu1 %v962_v44, %s2433_s3  ;;  %v968_v49 = vmul.f32 %v966_v48, %v962_v44 }
 0xd67   :  { %v971_v46 = vpop.permute.xlu1 %970 }
 0xd68   :  { %v973_v47 = vmul.f32 %v971_v46, %v962_v44 }
 0xd6a   :  { %975 = vrot.lane.b32.xlu1 %v973_v47, %s2429_s23 }
 0xddc   :  { %v976_v50 = vpop.permute.xlu1 %975 }
 0xddd   :  { %v978_v51 = vadd.f32 %v976_v50, %v968_v49 }
 0xddf   :  { %2318 = vtanh.f32 %v978_v51 }
 0xde9   :  { %v2319_v52 = vpop.eup %2318 }
 0xdea   :  { %981 = vrot.lane.b32.xlu0 %v2319_v52, %s2433_s3 }
 0xe5c   :  { %v982_v53 = vpop.permute.xlu0 %981 }
 0xe5d   :  { %v984_v54 = vmul.f32 %v982_v53, %v962_v44 }
 0xe5f   :  { %991 = vrot.lane.b32.xlu0 %v984_v54, %s2433_s3  ;;  %995 = vrot.lane.b32.xlu1 %v984_v54, %s2429_s23 }
 0xe63   :  { %986 = vrot.lane.b32.xlu1 %v978_v51, %s2434_s4 }
 0xed1   :  { %v992_v58 = vpop.permute.xlu0 %991  ;;  %v996_v59 = vpop.permute.xlu1 %995 }
 0xed2   :  { %994 = vst.msk [vmem:[#allocation2] sm:$0x3] %vm43_vm2, %v992_v58  ;;  %2033 = vmatmul.mubr.msk.f32.vlgmr.msra.gmra.mrb[8].mxu1 %vm205_vm8, %v996_v59  ;;  %v1473_v58 = vld [vmem:[%s1472_s20] sm:$0x1] }
 0xed3   :  { %1074 = vst.msk [vmem:[#allocation2] sm:$0x1] %vm70_vm3, %v1073_v55  ;;  %1078 = vst.msk [vmem:[#allocation2 + $0x1] sm:$0x1] %vm70_vm3, %v1077_v57  ;;  %2217 = vmatpush3.bf16.msra.mxu1 %v2508_v4  ;;  %2051 = vmatprep.mubr.msk.f32.mxu1 %vm2431_vm1, %v2432_v11  ;;  %v1469_v57 = vld [vmem:[%s1468_s17] sm:$0x1] }
 0xed4   :  { %2218 = vmatprep.subr.bf16.mxu1 %v2430_v3 }
 0xed5   :  { %v987_v60 = vpop.permute.xlu1 %986 }
 0xed6   :  { %989 = vst.msk [vmem:[#allocation3] sm:$0x3] %vm46_vm0, %v987_v60 }
 0xed7   :  { %2220 = vmatpush3.bf16.msra.mxu1 %v2518_v7 }
 0xed8   :  { %2221 = vmatprep.subr.bf16.mxu1 %v2430_v3 }
 0xeda   :  { %v1079_v62 = vld [vmem:[#allocation2] sm:$0x3] }
 0xedb   :  { %2223 = vmatpush3.bf16.msra.mxu1 %v2536_v12 }
 0xedc   :  { %2224 = vmatprep.subr.bf16.mxu1 %v2430_v3 }
 0xedd   :  { %v1161_v61 = vld [vmem:[#allocation3] sm:$0x3] }
 0xede   :  { %1163 = vrot.lane.b32.xlu1 %v1161_v61, %s2429_s23 }
 0xedf   :  { %2226 = vmatpush3.bf16.msra.mxu1 %v2546_v15 }
 0xee0   :  { %2245 = vmatprep.subr.bf16.mxu1 %v2430_v3 }
 0xee2   :  { %2052 = vmatmul.mubr.msk.f32.vlgmr.msra.gmra.mrb[10].mxu1 %vm83_vm4, %v1079_v62 }
 0xee3   :  { %2247 = vmatpush3.bf16.msra.mxu1 %v2587_v43  ;;  %2092 = vmatprep.mubr.msk.f32.mxu1 %vm2431_vm1, %v2432_v11 }
 0xee4   :  { %2248 = vmatprep.subr.bf16.mxu1 %v2430_v3 }
 0xee7   :  { %2250 = vmatpush3.bf16.msra.mxu1 %v2593_v45 }
 0xee8   :  { %2251 = vmatprep.subr.bf16.mxu1 %v2430_v3 }
 0xf50   :  { %v1164_v19 = vpop.permute.xlu1 %1163 }
 0xfa5   :  { %v1065_v63 = vpop.f32.mrb[8].mxu1 }
 0xfa6   :  { %v1066_v0 = vadd.f32 %v2638_v56, %v1065_v63  ;;  %v2034_v1 = vpop.f32.mrb[9].mxu1 }
 0xfa8   :  { %1070 = vst [vmem:[#allocation6 + $0x8] sm:$0x3] %v1066_v0 }
 0xfb5   :  { %v1149_v2 = vpop.f32.mrb[10].mxu1 }
 0xfb6   :  { %v1150_v5 = vadd.f32 %v2567_v21, %v1149_v2  ;;  %v2053_v6 = vpop.f32.mrb[11].mxu1 }
 0xfb8   :  { %v1761_v8 = vmul.f32 -1.442695, %v1150_v5 }
 0xfba   :  { %2320 = vpow2.f32 %v1761_v8 }
 0xfbb   :  { %2322 = vtanh.f32 %v1150_v5 }
 0xfc4   :  { %v2321_v9 = vpop.eup %2320 }
 0xfc5   :  { %v1157_v10 = vadd.f32 1.0, %v2321_v9  ;;  %v2323_v13 = vpop.eup %2322 }
 0xfc7   :  { %2324 = vrcp.f32 %v1157_v10 }
 0xfd1   :  { %v2325_v14 = vpop.eup %2324 }
 0xfd2   :  { %v1160_v16 = vsel %vm2570_vm7, %v2323_v13, %v2325_v14 }
 0xfd3   :  { %1168 = vrot.lane.b32.xlu0 %v1160_v16, %s2433_s3  ;;  %v1166_v20 = vmul.f32 %v1164_v19, %v1160_v16 }
0x1045   :  { %v1169_v17 = vpop.permute.xlu0 %1168 }
0x1046   :  { %v1171_v18 = vmul.f32 %v1169_v17, %v1160_v16 }
0x1048   :  { %1173 = vrot.lane.b32.xlu0 %v1171_v18, %s2429_s23 }
0x10ba   :  { %v1174_v22 = vpop.permute.xlu0 %1173 }
0x10bb   :  { %v1176_v23 = vadd.f32 %v1174_v22, %v1166_v20 }
0x10bd   :  { %2326 = vtanh.f32 %v1176_v23 }
0x10c7   :  { %v2327_v24 = vpop.eup %2326 }
0x10c8   :  { %1179 = vrot.lane.b32.xlu1 %v2327_v24, %s2433_s3 }
0x113a   :  { %v1180_v25 = vpop.permute.xlu1 %1179 }
0x113b   :  { %v1182_v26 = vmul.f32 %v1180_v25, %v1160_v16 }
0x113d   :  { %1189 = vrot.lane.b32.xlu1 %v1182_v26, %s2433_s3  ;;  %1193 = vrot.lane.b32.xlu0 %v1182_v26, %s2429_s23 }
0x1141   :  { %1184 = vrot.lane.b32.xlu0 %v1176_v23, %s2434_s4 }
0x11af   :  { %v1190_v29 = vpop.permute.xlu1 %1189  ;;  %v1194_v31 = vpop.permute.xlu0 %1193 }
0x11b0   :  { %1192 = vst.msk [vmem:[#allocation2] sm:$0x3] %vm43_vm2, %v1190_v29  ;;  %2063 = vmatmul.mubr.msk.f32.vlgmr.msra.gmra.mrb[10].mxu0 %vm205_vm8, %v1194_v31 }
0x11b1   :  { %2235 = vmatpush3.bf16.msra.mxu0 %v2508_v4  ;;  %2081 = vmatprep.mubr.msk.f32.mxu0 %vm2431_vm1, %v2432_v11  ;;  %1272 = vst.msk [vmem:[#allocation2] sm:$0x1] %vm70_vm3, %v1271_v27  ;;  %1276 = vst.msk [vmem:[#allocation2 + $0x1] sm:$0x1] %vm70_vm3, %v1275_v28 }
0x11b2   :  { %2236 = vmatprep.subr.bf16.mxu0 %v2430_v3 }
0x11b3   :  { %v1185_v32 = vpop.permute.xlu0 %1184 }
0x11b4   :  { %1187 = vst.msk [vmem:[#allocation3] sm:$0x3] %vm46_vm0, %v1185_v32 }
0x11b5   :  { %2238 = vmatpush3.bf16.msra.mxu0 %v2518_v7 }
0x11b6   :  { %2239 = vmatprep.subr.bf16.mxu0 %v2430_v3 }
0x11b8   :  { %v1277_v34 = vld [vmem:[#allocation2] sm:$0x3] }
0x11b9   :  { %2241 = vmatpush3.bf16.msra.mxu0 %v2536_v12 }
0x11ba   :  { %2242 = vmatprep.subr.bf16.mxu0 %v2430_v3 }
0x11bb   :  { %v1359_v33 = vld [vmem:[#allocation3] sm:$0x3] }
0x11bc   :  { %1361 = vrot.lane.b32.xlu0 %v1359_v33, %s2429_s23 }
0x11bd   :  { %2244 = vmatpush3.bf16.msra.mxu0 %v2546_v15 }
0x11be   :  { %2263 = vmatprep.subr.bf16.mxu0 %v2430_v3 }
0x11c0   :  { %2082 = vmatmul.mubr.msk.f32.vlgmr.msra.gmra.mrb[12].mxu0 %vm83_vm4, %v1277_v34 }
0x11c1   :  { %2265 = vmatpush3.bf16.msra.mxu0 %v2587_v43  ;;  %2122 = vmatprep.mubr.msk.f32.mxu0 %vm2431_vm1, %v2432_v11 }
0x11c2   :  { %2266 = vmatprep.subr.bf16.mxu0 %v2430_v3 }
0x11c5   :  { %2268 = vmatpush3.bf16.msra.mxu0 %v2593_v45 }
0x122e   :  { %v1362_v49 = vpop.permute.xlu0 %1361 }
0x1283   :  { %v1263_v35 = vpop.f32.mrb[10].mxu0 }
0x1284   :  { %v1264_v36 = vadd.f32 %v2638_v56, %v1263_v35  ;;  %v2064_v37 = vpop.f32.mrb[11].mxu0 }
0x1286   :  { %1268 = vst [vmem:[#allocation6 + $0xa] sm:$0x3] %v1264_v36 }
0x1293   :  { %v1347_v38 = vpop.f32.mrb[12].mxu0 }
0x1294   :  { %v1348_v39 = vadd.f32 %v2567_v21, %v1347_v38  ;;  %v2083_v40 = vpop.f32.mrb[13].mxu0 }
0x1296   :  { %v1766_v41 = vmul.f32 -1.442695, %v1348_v39 }
0x1298   :  { %2328 = vpow2.f32 %v1766_v41 }
0x1299   :  { %2330 = vtanh.f32 %v1348_v39 }
0x12a2   :  { %v2329_v42 = vpop.eup %2328 }
0x12a3   :  { %v1355_v43 = vadd.f32 1.0, %v2329_v42  ;;  %v2331_v44 = vpop.eup %2330 }
0x12a5   :  { %2332 = vrcp.f32 %v1355_v43 }
0x12af   :  { %v2333_v46 = vpop.eup %2332 }
0x12b0   :  { %v1358_v45 = vsel %vm2570_vm7, %v2331_v44, %v2333_v46 }
0x12b1   :  { %1366 = vrot.lane.b32.xlu1 %v1358_v45, %s2433_s3  ;;  %v1364_v50 = vmul.f32 %v1362_v49, %v1358_v45 }
0x1323   :  { %v1367_v47 = vpop.permute.xlu1 %1366 }
0x1324   :  { %v1369_v48 = vmul.f32 %v1367_v47, %v1358_v45 }
0x1326   :  { %1371 = vrot.lane.b32.xlu1 %v1369_v48, %s2429_s23 }
0x1398   :  { %v1372_v51 = vpop.permute.xlu1 %1371 }
0x1399   :  { %v1374_v52 = vadd.f32 %v1372_v51, %v1364_v50 }
0x139b   :  { %2334 = vtanh.f32 %v1374_v52 }
0x13a5   :  { %v2335_v53 = vpop.eup %2334 }
0x13a6   :  { %1377 = vrot.lane.b32.xlu0 %v2335_v53, %s2433_s3 }
0x1418   :  { %v1378_v54 = vpop.permute.xlu0 %1377 }
0x1419   :  { %v1380_v55 = vmul.f32 %v1378_v54, %v1358_v45 }
0x141b   :  { %1387 = vrot.lane.b32.xlu0 %v1380_v55, %s2433_s3  ;;  %1391 = vrot.lane.b32.xlu1 %v1380_v55, %s2429_s23 }
0x141f   :  { %1382 = vrot.lane.b32.xlu1 %v1374_v52, %s2434_s4 }
0x148d   :  { %v1388_v59 = vpop.permute.xlu0 %1387  ;;  %v1392_v60 = vpop.permute.xlu1 %1391 }
0x148e   :  { %1390 = vst.msk [vmem:[#allocation2] sm:$0x3] %vm43_vm2, %v1388_v59  ;;  %2093 = vmatmul.mubr.msk.f32.vlgmr.msra.gmra.mrb[12].mxu1 %vm205_vm8, %v1392_v60 }
0x148f   :  { %2253 = vmatpush3.bf16.msra.mxu1 %v2508_v4  ;;  %2111 = vmatprep.mubr.msk.f32.mxu1 %vm2431_vm1, %v2432_v11  ;;  %1470 = vst.msk [vmem:[#allocation2] sm:$0x1] %vm70_vm3, %v1469_v57  ;;  %1474 = vst.msk [vmem:[#allocation2 + $0x1] sm:$0x1] %vm70_vm3, %v1473_v58 }
0x1490   :  { %2254 = vmatprep.subr.bf16.mxu1 %v2430_v3 }
0x1491   :  { %v1383_v61 = vpop.permute.xlu1 %1382 }
0x1492   :  { %1385 = vst.msk [vmem:[#allocation3] sm:$0x3] %vm46_vm0, %v1383_v61 }
0x1493   :  { %2256 = vmatpush3.bf16.msra.mxu1 %v2518_v7 }
0x1494   :  { %2257 = vmatprep.subr.bf16.mxu1 %v2430_v3 }
0x1496   :  { %v1475_v11 = vld [vmem:[#allocation2] sm:$0x3] }
0x1497   :  { %2259 = vmatpush3.bf16.msra.mxu1 %v2536_v12 }
0x1498   :  { %2260 = vmatprep.subr.bf16.mxu1 %v2430_v3 }
0x1499   :  { %v1557_v4 = vld [vmem:[#allocation3] sm:$0x3] }
0x149a   :  { %1559 = vrot.lane.b32.xlu1 %v1557_v4, %s2429_s23 }
0x149b   :  { %2262 = vmatpush3.bf16.msra.mxu1 %v2546_v15 }
0x149e   :  { %2112 = vmatmul.mubr.msk.f32.vlgmr.msra.gmra.mrb[14].mxu1 %vm83_vm4, %v1475_v11 }
0x150c   :  { %v1560_v13 = vpop.permute.xlu1 %1559 }
0x1561   :  { %v1461_v62 = vpop.f32.mrb[12].mxu1 }
0x1562   :  { %v1462_v63 = vadd.f32 %v2638_v56, %v1461_v62  ;;  %v2094_v0 = vpop.f32.mrb[13].mxu1 }
0x1564   :  { %1466 = vst [vmem:[#allocation6 + $0xc] sm:$0x3] %v1462_v63 }
0x1571   :  { %v1545_v7 = vpop.f32.mrb[14].mxu1 }
0x1572   :  { %v1546_v1 = vadd.f32 %v2567_v21, %v1545_v7  ;;  %v2113_v2 = vpop.f32.mrb[15].mxu1 }
0x1574   :  { %v1771_v12 = vmul.f32 -1.442695, %v1546_v1 }
0x1576   :  { %2336 = vpow2.f32 %v1771_v12 }
0x1577   :  { %2338 = vtanh.f32 %v1546_v1 }
0x1580   :  { %v2337_v3 = vpop.eup %2336 }
0x1581   :  { %v1553_v5 = vadd.f32 1.0, %v2337_v3  ;;  %v2339_v6 = vpop.eup %2338 }
0x1583   :  { %2340 = vrcp.f32 %v1553_v5 }
0x158d   :  { %v2341_v15 = vpop.eup %2340 }
0x158e   :  { %v1556_v8 = vsel %vm2570_vm7, %v2339_v6, %v2341_v15 }
0x158f   :  { %1564 = vrot.lane.b32.xlu0 %v1556_v8, %s2433_s3  ;;  %v1562_v21 = vmul.f32 %v1560_v13, %v1556_v8 }
0x1601   :  { %v1565_v9 = vpop.permute.xlu0 %1564 }
0x1602   :  { %v1567_v10 = vmul.f32 %v1565_v9, %v1556_v8 }
0x1604   :  { %1569 = vrot.lane.b32.xlu0 %v1567_v10, %s2429_s23 }
0x1676   :  { %v1570_v14 = vpop.permute.xlu0 %1569 }
0x1677   :  { %v1572_v16 = vadd.f32 %v1570_v14, %v1562_v21 }
0x1679   :  { %2342 = vtanh.f32 %v1572_v16 }
0x1683   :  { %v2343_v17 = vpop.eup %2342 }
0x1684   :  { %1575 = vrot.lane.b32.xlu1 %v2343_v17, %s2433_s3 }
0x16f6   :  { %v1576_v18 = vpop.permute.xlu1 %1575 }
0x16f7   :  { %v1578_v19 = vmul.f32 %v1576_v18, %v1556_v8 }
0x16f9   :  { %1585 = vrot.lane.b32.xlu1 %v1578_v19, %s2433_s3  ;;  %1589 = vrot.lane.b32.xlu0 %v1578_v19, %s2429_s23  ;;  %s1691_s3 = sshll.u32 %s2435_s1, 4  ;;  %s1692_s3 = int_to_ptr.vmem [resolvable:$true] %s1691_s3 }
0x16fa   :  { %s2356_s0 = scalar_lea.vmem %s1692_s3, 32  ;;  %p2361_p6 = scmp.lt.s32.totalorder %s1692_s3, %s1692_s3 }
0x16fb   :  { %p2357_p5 = scmp.ne.s32.totalorder %s1692_s3, %s2356_s0  ;;  %p2362_p7 = scmp.lt.s32.totalorder %s2356_s0, %s2356_s0 }
0x16fd   :  { %1580 = vrot.lane.b32.xlu0 %v1572_v16, %s2434_s4  ;;  %p2363_p8 = por %p2362_p7, %p2361_p6 }
0x16ff   :  { %p2364_p9 = pnand %p2363_p8, %p2357_p5 }
0x176b   :  { %v1586_v30 = vpop.permute.xlu1 %1585  ;;  %v1590_v20 = vpop.permute.xlu0 %1589 }
0x176c   :  { %1588 = vst.msk [vmem:[#allocation2] sm:$0x3] %vm43_vm2, %v1586_v30  ;;  %2123 = vmatmul.mubr.msk.f32.vlgmr.msra.gmra.mrb[14].mxu0 %vm205_vm8, %v1590_v20 }
0x176f   :  { %v1581_v22 = vpop.permute.xlu0 %1580 }
0x1770   :  { %1583 = vst.msk [vmem:[#allocation3] sm:$0x3] %vm46_vm0, %v1581_v22 }
0x1773   :  { %v1665_v23 = vld [vmem:[#allocation2] sm:$0x3] }
0x1774   :  { %1667 = vrot.lane.b32.xlu1 %v1665_v23, %s2434_s4 }
0x1777   :  { %v1671_v24 = vld [vmem:[#allocation3] sm:$0x3] }
0x1778   :  { %1672 = vst.msk [vmem:[#allocation10] sm:$0x3] %vm46_vm0, %v1671_v24 }
0x17e6   :  { %v1668_v25 = vpop.permute.xlu1 %1667 }
0x17e7   :  { %1670 = vst.msk [vmem:[#allocation8] sm:$0x3] %vm46_vm0, %v1668_v25 }
0x17e8   :  { %2367 = shalt.err (!%p2364_p9)
}
0x17e9   :  { %s2368_s22 = scalar_lea.hbm %s2930_s9, 32 }
0x17ea   :  { %p2369_p10 = scmp.ne.s32.totalorder %s2930_s9, %s2368_s22  ;;  %p2372_p11 = scmp.lt.u32.totalorder %s2368_s22, %s2930_s9 }
0x17ec   :  { %p2374_p12 = pnand %p2372_p11, %p2369_p10 }
0x17ee   :  { %2377 = shalt.err (!%p2374_p12)
}
0x17ef   :  { %1694 = dma.vmem_to_hbm [thread:$0]  %s1692_s3, 32, %s2930_s9, [#allocation9]  }
0x17f0   :  { %s2378_s29 = scalar_lea.vmem %s1702_s2, 32  ;;  %p2383_p0 = scmp.lt.s32.totalorder %s1702_s2, %s1702_s2 }
0x17f1   :  { %p2379_p13 = scmp.ne.s32.totalorder %s1702_s2, %s2378_s29  ;;  %p2384_p1 = scmp.lt.s32.totalorder %s2378_s29, %s2378_s29 }
0x17f3   :  { %p2385_p2 = por %p2384_p1, %p2383_p0 }
0x17f5   :  { %p2386_p3 = pnand %p2385_p2, %p2379_p13 }
0x17f7   :  { %2389 = shalt.err (!%p2386_p3)
}
0x17f8   :  { %s2390_s12 = scalar_lea.hbm %s2931_s10, 32 }
0x17f9   :  { %p2391_p4 = scmp.ne.s32.totalorder %s2931_s10, %s2390_s12  ;;  %p2394_p5 = scmp.lt.u32.totalorder %s2390_s12, %s2931_s10 }
0x17fb   :  { %p2396_p6 = pnand %p2394_p5, %p2391_p4 }
0x17fd   :  { %2399 = shalt.err (!%p2396_p6)
}
0x17fe   :  { %1704 = dma.vmem_to_hbm [thread:$0]  %s1702_s2, 32, %s2931_s10, [#allocation9]  }
0x17ff   :  { %s2437_s17 = smov [#allocation6]  }
0x1800   :  { %s1678_s18 = sshll.u32 %s2437_s17, 4  ;;  %s1679_s18 = int_to_ptr.vmem [resolvable:$true] %s1678_s18 }
0x1801   :  { %s2400_s19 = scalar_lea.vmem %s1679_s18, 256  ;;  %p2405_p8 = scmp.lt.s32.totalorder %s1679_s18, %s1679_s18 }
0x1802   :  { %p2401_p7 = scmp.ne.s32.totalorder %s1679_s18, %s2400_s19  ;;  %p2406_p9 = scmp.lt.s32.totalorder %s2400_s19, %s2400_s19 }
0x1804   :  { %p2407_p10 = por %p2406_p9, %p2405_p8 }
0x1806   :  { %p2408_p11 = pnand %p2407_p10, %p2401_p7 }
0x183f   :  { %v1659_v26 = vpop.f32.mrb[14].mxu0 }
0x1840   :  { %v1660_v27 = vadd.f32 %v2638_v56, %v1659_v26  ;;  %v2124_v28 = vpop.f32.mrb[15].mxu0 }
0x1842   :  { %1664 = vst [vmem:[#allocation6 + $0xe] sm:$0x3] %v1660_v27 }
0x1843   :  { %2411 = shalt.err (!%p2408_p11)
}
0x1844   :  { %s2412_s3 = scalar_lea.hbm %s2929_s8, 256 }
0x1845   :  { %p2413_p12 = scmp.ne.s32.totalorder %s2929_s8, %s2412_s3  ;;  %p2416_p13 = scmp.lt.u32.totalorder %s2412_s3, %s2929_s8 }
0x1847   :  { %p2418_p0 = pnand %p2416_p13, %p2413_p12 }
0x1849   :  { %2421 = shalt.err (!%p2418_p0)
}
0x184a   :  { %s2438_s4 = smov 2  }
0x184b   :  { %1684 = dma.vmem_to_hbm [thread:$0]  %s1679_s18, 256, %s2929_s8, [#allocation7], %s2429_s23, %s2429_s23, %s2438_s4  }
0x184c   :  { %2424 = dma.done.wait [#allocation7], 256  }
0x184d   :  { %2425 = vsyncadd [#allocation7], 4294967040 }
0x184e   :  { %2426 = dma.done.wait [#allocation9], 64  }
0x184f   :  { %2427 = vsyncadd [#allocation9], 4294967232 }
0x1850   :  { %1714 = vsyncpa [#allocation7], 1 }
0x1851   :  { %1715 = vsyncpa [#allocation9], 1 }

</bundles_post_ra>
